<compile_context>
chip_gen: v6e
topology: v6e:2x2x1
jax: 0.10.0
libtpu: 0.0.40
codegen_flags: <defaults>
</compile_context>

<pallas_src>
import functools
import math

import jax
import jax.numpy as jnp
from jax.experimental import pallas as pl
from jax.experimental.pallas import tpu as pltpu


# -----------------------------------------------------------------------------
# Pallas kernel: D HMC draws per grid step, chain state (z, U, grad U) in VMEM
# -----------------------------------------------------------------------------
def _hmc_chain_kernel(p0_ref, logu_ref, z0_ref, t_ref, wfwd_ref, wgt_ref,
                      zout_ref, uout_ref, z_sc, u_sc, g_sc, *,
                      dz, dx, step_size, n_leapfrog, n_draws_per_block,
                      logz_const):
    """Grid = (chain_tiles, draw_blocks).  Axis 1 is the sequential draw-block
    axis; (z, U, grad U) carry across it in VMEM scratch and are re-initialized
    whenever a new chain tile starts (block index 0)."""
    wfwd = wfwd_ref[...]        # (dz, width):  [A | Wg | 0]  with A = Ew Ew^T
    wgt = wgt_ref[...]          # (dx, dz)  == Wg^T  (pre-transposed outside)
    t = t_ref[...]              # (B, dx)   == x - bg (bg folded outside)
    eps = jnp.float32(step_size)

    def _fwd(z):
        # One MXU push covers both z@A and z@Wg.
        zf = jnp.dot(z, wfwd, preferred_element_type=jnp.float32)
        za = zf[:, :dz]                      # z @ A
        r = zf[:, dz:dz + dx] - t            # z @ Wg - (x - bg)
        return za, r

    def grad_only(z):
        # grad U = z A + z + (z Wg - t) Wg^T   (no cross-lane reductions)
        za, r = _fwd(z)
        return za + z + jnp.dot(r, wgt, preferred_element_type=jnp.float32)

    def potential_and_grad(z):
        za, r = _fwd(z)
        u = (0.5 * jnp.sum((za + z) * z, axis=-1, keepdims=True)
             + logz_const
             + 0.5 * jnp.sum(r * r, axis=-1, keepdims=True))
        g = za + z + jnp.dot(r, wgt, preferred_element_type=jnp.float32)
        return u, g

    # First draw block of each chain tile: load the initial state, its
    # potential and its gradient (the gradient carry saves one potential
    # evaluation per draw thereafter).
    @pl.when(pl.program_id(1) == 0)
    def _():
        z_init = z0_ref[...]
        u_init, g_init = potential_and_grad(z_init)
        z_sc[...] = z_init
        u_sc[...] = u_init
        g_sc[...] = g_init

    # D draws per grid step (amortizes launch + DMA fixed cost by ~D x).
    @pl.loop(0, n_draws_per_block)
    def _(j):
        z_cur = z_sc[...]
        u_cur = u_sc[...]
        g_cur = g_sc[...]
        p0 = p0_ref[j]                        # (B, dz)
        logu = logu_ref[j]                    # (B, 1)

        # Fixed-length leapfrog integration (n_leapfrog is static -> unrolled).
        p = p0 - 0.5 * eps * g_cur            # uses the carried gradient
        z_new = z_cur
        for _ in range(n_leapfrog - 1):
            z_new = z_new + eps * p
            p = p - eps * grad_only(z_new)
        z_new = z_new + eps * p
        u_new, g_new = potential_and_grad(z_new)
        p = p - 0.5 * eps * g_new

        # Metropolis accept / reject (per chain).
        ke0 = 0.5 * jnp.sum(p0 * p0, axis=-1, keepdims=True)
        ke1 = 0.5 * jnp.sum(p * p, axis=-1, keepdims=True)
        accept = logu < (u_cur + ke0) - (u_new + ke1)       # (B, 1)
        z_out = jnp.where(accept, z_new, z_cur)
        u_out = jnp.where(accept, u_new, u_cur)
        g_out = jnp.where(accept, g_new, g_cur)

        z_sc[...] = z_out
        u_sc[...] = u_out
        g_sc[...] = g_out
        zout_ref[j] = z_out
        uout_ref[j] = u_out


# -----------------------------------------------------------------------------
# NutsPosterior forward (Standard multiprocess mode): fused parallel-chain HMC
# -----------------------------------------------------------------------------
class NutsPosteriorPallas:
    def __init__(self, num_samples, thinning, warmup_steps, step_size,
                 num_leapfrog=5, multiprocess="Standard",
                 chain_tile=None, draw_block=64):
        self.num_samples = num_samples
        self.thinning = thinning
        self.warmup_steps = warmup_steps
        self.step_size = step_size
        self.num_leapfrog = num_leapfrog
        self.multiprocess = multiprocess
        self.chain_tile = chain_tile
        self.draw_block = draw_block
        # Thinning keeps the FIRST draw of each thinning block (as in the
        # original forward()), so only nb_steps draws are ever used.
        self.nb_steps = (num_samples - 1) * thinning + 1 + warmup_steps
        self.total_draws = self.nb_steps

    # ---- the fused Pallas chain -------------------------------------------
    def sample_chain(self, z, x, wg, bg, ew, p0_all, logu_all):
        """Runs the full HMC chain in one pallas_call.

        Returns (draws, potentials) of shapes (total_draws, C, Dz) and
        (total_draws, C, 1)."""
        num_chains, dz = z.shape
        dx = x.shape[1]
        total_draws = p0_all.shape[0]

        # Chain-tile grid axis (marked "parallel"): lets multi-core parts split
        # chains across TensorCores when num_chains is large; degenerate
        # (size 1) at small chain counts (splitting there only adds overhead).
        chain_tile = self.chain_tile
        if (chain_tile is None or num_chains % chain_tile != 0
                or (chain_tile != num_chains and chain_tile % 8 != 0)):
            chain_tile = num_chains
        num_ctiles = num_chains // chain_tile

        # Draw blocking: D draws per grid step; pad the draw axis to a multiple
        # of D (padded tail draws are discarded, they only extend the chain).
        dblk = max(1, min(int(self.draw_block), total_draws))
        num_dblocks = -(-total_draws // dblk)
        padded_draws = num_dblocks * dblk
        if padded_draws != total_draws:
            pad = padded_draws - total_draws
            p0_all = jnp.concatenate(
                [p0_all, jnp.zeros((pad,) + p0_all.shape[1:], p0_all.dtype)], 0)
            logu_all = jnp.concatenate(
                [logu_all, jnp.zeros((pad,) + logu_all.shape[1:],
                                     logu_all.dtype)], 0)

        # ---- fold parameters once, outside the kernel ----------------------
        a = jnp.dot(ew, ew.T, precision=jax.lax.Precision.HIGHEST)   # (dz, dz)
        width = ((dz + dx + 127) // 128) * 128       # compact lane-dense slab
        wfwd = jnp.zeros((dz, width), jnp.float32)
        wfwd = wfwd.at[:, :dz].set(a.astype(jnp.float32))
        wfwd = wfwd.at[:, dz:dz + dx].set(wg.astype(jnp.float32))
        wgt = wg.T.astype(jnp.float32)
        t = (x - bg).astype(jnp.float32)             # bg folded into data
        logz_const = 0.5 * dz * math.log(2.0 * math.pi)

        kernel = functools.partial(
            _hmc_chain_kernel,
            dz=dz, dx=dx,
            step_size=float(self.step_size),
            n_leapfrog=int(self.num_leapfrog),
            n_draws_per_block=int(dblk),
            logz_const=float(logz_const),
        )

        draws, us = pl.pallas_call(
            kernel,
            grid=(num_ctiles, num_dblocks),
            in_specs=[
                # per-block pre-generated momenta / accept log-uniforms
                pl.BlockSpec((dblk, chain_tile, dz), lambda c, i: (i, c, 0)),
                pl.BlockSpec((dblk, chain_tile, 1), lambda c, i: (i, c, 0)),
                # constants: block index never changes with i -> DMA'd once
                pl.BlockSpec((chain_tile, dz), lambda c, i: (c, 0)),   # z0
                pl.BlockSpec((chain_tile, dx), lambda c, i: (c, 0)),   # x - bg
                pl.BlockSpec((dz, width), lambda c, i: (0, 0)),        # [A | Wg]
                pl.BlockSpec((dx, dz), lambda c, i: (0, 0)),           # Wg^T
            ],
            out_specs=(
                pl.BlockSpec((dblk, chain_tile, dz), lambda c, i: (i, c, 0)),
                pl.BlockSpec((dblk, chain_tile, 1), lambda c, i: (i, c, 0)),
            ),
            out_shape=(
                jax.ShapeDtypeStruct((padded_draws, num_chains, dz), jnp.float32),
                jax.ShapeDtypeStruct((padded_draws, num_chains, 1), jnp.float32),
            ),
            scratch_shapes=[
                pltpu.VMEM((chain_tile, dz), jnp.float32),   # z carry
                pltpu.VMEM((chain_tile, 1), jnp.float32),    # U carry
                pltpu.VMEM((chain_tile, dz), jnp.float32),   # grad U carry
            ],
            compiler_params=pltpu.CompilerParams(
                dimension_semantics=("parallel", "arbitrary")),
        )(p0_all.astype(jnp.float32), logu_all.astype(jnp.float32),
          z.astype(jnp.float32), t, wfwd, wgt)
        return draws[:total_draws], us[:total_draws]

    # ---- forward() (Standard multiprocess mode) ----------------------------
    def __call__(self, key, z, x, wg, bg, ew):
        num_chains = z.shape[0]
        input_size = z.shape[1:]
        total_draws = self.total_draws

        # Pre-generate ALL randomness once (no per-draw RNG dispatch).
        k_mom, k_acc = jax.random.split(key)
        p0_all = jax.random.normal(
            k_mom, (total_draws, num_chains) + tuple(input_size),
            dtype=jnp.float32)
        logu_all = jnp.log(jax.random.uniform(
            k_acc, (total_draws, num_chains, 1), dtype=jnp.float32,
            minval=1e-12, maxval=1.0))

        draws, _ = self.sample_chain(z, x, wg, bg, ew, p0_all, logu_all)

        # Warmup discard + thinning: keep the FIRST draw of each thinning
        # block, matching the original forward()'s reshape(...)[:, 0].
        post = draws[self.warmup_steps:]            # ((S-1)*T + 1, C, Dz)
        kept = post[::self.thinning]                # (S, C, Dz)
        samples = kept.reshape(self.num_samples * num_chains, *input_size)
        return samples


# -----------------------------------------------------------------------------
# Main
# -----------------------------------------------------------------------------
if __name__ == "__main__":
    # Keep XLA reference matmuls at f32 precision so the numerical comparison
    # against the MXU f32 path below is meaningful.
    jax.config.update("jax_default_matmul_precision", "highest")

    num_chains, dz, dx = 8, 32, 16

    key = jax.random.PRNGKey(0)
    k_z, k_x, k_wg, k_bg, k_ew, k_run = jax.random.split(key, 6)

    z0 = jax.random.normal(k_z, (num_chains, dz), dtype=jnp.float32)
    x = jax.random.normal(k_x, (num_chains, dx), dtype=jnp.float32)

    # Deterministic synthetic parameters for generator / energy.
    wg = 0.1 * jax.random.normal(k_wg, (dz, dx), dtype=jnp.float32)
    bg = 0.05 * jax.random.normal(k_bg, (1, dx), dtype=jnp.float32)
    ew = 0.1 * jax.random.normal(k_ew, (dz, dz), dtype=jnp.float32)

    # draw_block=4 deliberately forces multiple draw blocks + padding at this
    # toy size so the multi-block carry path is exercised; use 64-256 at scale.
    sampler = NutsPosteriorPallas(
        num_samples=4, thinning=2, warmup_steps=3, step_size=0.05,
        num_leapfrog=5, multiprocess="Standard", draw_block=4)

    run = jax.jit(functools.partial(sampler))
    samples = jax.block_until_ready(run(k_run, z0, x, wg, bg, ew))

    assert samples.shape == (sampler.num_samples * num_chains, dz), samples.shape
    assert samples.dtype == jnp.float32
    assert bool(jnp.all(jnp.isfinite(samples)))

    # ---- validation: forced-accept chain vs. pure-JAX reference -------------
    # (forced accept makes the trajectory a smooth function of the inputs, so
    #  the comparison is robust to f32 rounding; it exercises the full leapfrog
    #  gradient path and the potential values U).
    total_draws = sampler.total_draws
    k_mom, _ = jax.random.split(k_run)
    p0_all = jax.random.normal(k_mom, (total_draws, num_chains, dz),
                               dtype=jnp.float32)
    logu_forced = jnp.full((total_draws, num_chains, 1), -1e30, jnp.float32)

    def ref_potential(zc):
        ze = zc @ ew
        r = zc @ wg + bg - x
        u = (0.5 * jnp.sum(ze * ze, -1, keepdims=True)
             + 0.5 * jnp.sum(zc * zc, -1, keepdims=True)
             + 0.5 * dz * math.log(2.0 * math.pi)
             + 0.5 * jnp.sum(r * r, -1, keepdims=True))
        g = ze @ ew.T + zc + r @ wg.T
        return u, g

    def ref_chain(z_init, p0s, logus):
        eps = jnp.float32(sampler.step_size)

        def step(carry, inp):
            z_cur, u_cur = carry
            p0, logu = inp
            _, g = ref_potential(z_cur)
            p = p0 - 0.5 * eps * g
            zz = z_cur
            for _ in range(sampler.num_leapfrog - 1):
                zz = zz + eps * p
                _, g = ref_potential(zz)
                p = p - eps * g
            zz = zz + eps * p
            u_new, g = ref_potential(zz)
            p = p - 0.5 * eps * g
            ke0 = 0.5 * jnp.sum(p0 * p0, -1, keepdims=True)
            ke1 = 0.5 * jnp.sum(p * p, -1, keepdims=True)
            accept = logu < (u_cur + ke0) - (u_new + ke1)
            z_out = jnp.where(accept, zz, z_cur)
            u_out = jnp.where(accept, u_new, u_cur)
            return (z_out, u_out), (z_out, u_out)

        u0, _ = ref_potential(z_init)
        _, (zs, us) = jax.lax.scan(step, (z_init, u0), (p0s, logus))
        return zs, us

    draws_k, us_k = jax.jit(sampler.sample_chain)(
        z0, x, wg, bg, ew, p0_all, logu_forced)
    draws_r, us_r = jax.jit(ref_chain)(z0, p0_all, logu_forced)
    draws_k, us_k, draws_r, us_r = jax.block_until_ready(
        (draws_k, us_k, draws_r, us_r))

    assert draws_k.shape == draws_r.shape, (draws_k.shape, draws_r.shape)
    assert jnp.allclose(draws_k, draws_r, atol=5e-3, rtol=5e-3), \
        float(jnp.max(jnp.abs(draws_k - draws_r)))
    assert jnp.allclose(us_k, us_r, atol=5e-3, rtol=5e-3), \
        float(jnp.max(jnp.abs(us_k - us_r)))

    print("KERNEL_OK")
</pallas_src>

<mosaic_0001>
module attributes {stable_mosaic.version = 11 : i64} {
  func.func @_hmc_chain_kernel(%arg0: i32, %arg1: i32, %arg2: memref<4x8x32xf32, #tpu.memory_space<vmem>>, %arg3: memref<4x8x1xf32, #tpu.memory_space<vmem>>, %arg4: memref<8x32xf32, #tpu.memory_space<vmem>>, %arg5: memref<8x16xf32, #tpu.memory_space<vmem>>, %arg6: memref<32x128xf32, #tpu.memory_space<vmem>>, %arg7: memref<16x32xf32, #tpu.memory_space<vmem>>, %arg8: memref<4x8x32xf32, #tpu.memory_space<vmem>>, %arg9: memref<4x8x1xf32, #tpu.memory_space<vmem>>, %arg10: memref<8x32xf32, #tpu.memory_space<vmem>>, %arg11: memref<8x1xf32, #tpu.memory_space<vmem>>, %arg12: memref<8x32xf32, #tpu.memory_space<vmem>>) attributes {dimension_semantics = [#tpu.dimension_semantics<parallel>, #tpu.dimension_semantics<arbitrary>], iteration_bounds = array<i64: 1, 3>, scalar_prefetch = 0 : i64, scratch_operands = 3 : i64, tpu.core_type = #tpu.core_type<tc>, window_params = [{transform_indices = @transform_0, window_bounds = array<i64: 4, 8, 32>}, {transform_indices = @transform_1, window_bounds = array<i64: 4, 8, 1>}, {transform_indices = @transform_2, window_bounds = array<i64: 8, 32>}, {transform_indices = @transform_3, window_bounds = array<i64: 8, 16>}, {pipeline_mode = #tpu.pipeline_mode<synchronous>, transform_indices = @transform_4, window_bounds = array<i64: 32, 128>}, {pipeline_mode = #tpu.pipeline_mode<synchronous>, transform_indices = @transform_5, window_bounds = array<i64: 16, 32>}, {transform_indices = @transform_6, window_bounds = array<i64: 4, 8, 32>}, {transform_indices = @transform_7, window_bounds = array<i64: 4, 8, 1>}]} {
    %c0 = arith.constant 0 : index
    %c0_0 = arith.constant 0 : index
    %0 = vector.load %arg6[%c0, %c0_0] : memref<32x128xf32, #tpu.memory_space<vmem>>, vector<32x128xf32>
    %c0_1 = arith.constant 0 : index
    %c0_2 = arith.constant 0 : index
    %1 = vector.load %arg7[%c0_1, %c0_2] : memref<16x32xf32, #tpu.memory_space<vmem>>, vector<16x32xf32>
    %c0_3 = arith.constant 0 : index
    %c0_4 = arith.constant 0 : index
    %2 = vector.load %arg5[%c0_3, %c0_4] : memref<8x16xf32, #tpu.memory_space<vmem>>, vector<8x16xf32>
    %c0_i32 = arith.constant 0 : i32
    %3 = arith.cmpi eq, %arg1, %c0_i32 : i32
    %4 = arith.extui %3 : i1 to i32
    %c0_i32_5 = arith.constant 0 : i32
    %5 = arith.cmpi ne, %4, %c0_i32_5 : i32
    scf.if %5 {
      %c0_8 = arith.constant 0 : index
      %c0_9 = arith.constant 0 : index
      %7 = vector.load %arg4[%c0_8, %c0_9] : memref<8x32xf32, #tpu.memory_space<vmem>>, vector<8x32xf32>
      %cst_10 = arith.constant dense<0.000000e+00> : vector<8x128xf32>
      %8 = tpu.matmul %7, %0, %cst_10 {dimension_numbers = #tpu.dot_dimension_numbers<[1], [0], [0], [1], [0, 0, 1, 1], [], []>, precision = #tpu.contract_precision<fp32>} : vector<8x32xf32>, vector<32x128xf32>, vector<8x128xf32> -> vector<8x128xf32>
      %9 = vector.extract_strided_slice %8 {offsets = [0, 0], sizes = [8, 32], strides = [1, 1]} : vector<8x128xf32> to vector<8x32xf32>
      %10 = vector.extract_strided_slice %8 {offsets = [0, 32], sizes = [8, 16], strides = [1, 1]} : vector<8x128xf32> to vector<8x16xf32>
      %11 = arith.subf %10, %2 : vector<8x16xf32>
      %12 = arith.addf %9, %7 : vector<8x32xf32>
      %13 = arith.mulf %12, %7 : vector<8x32xf32>
      %cst_11 = arith.constant dense<0.000000e+00> : vector<8xf32>
      %14 = vector.multi_reduction <add>, %13, %cst_11 [1] : vector<8x32xf32> to vector<8xf32>
      %15 = vector.shape_cast %14 : vector<8xf32> to vector<8x1xf32>
      %cst_12 = arith.constant 5.000000e-01 : f32
      %16 = vector.broadcast %cst_12 : f32 to vector<8x1xf32>
      %17 = arith.mulf %16, %15 : vector<8x1xf32>
      %cst_13 = arith.constant 29.4060326 : f32
      %18 = vector.broadcast %cst_13 : f32 to vector<8x1xf32>
      %19 = arith.addf %17, %18 : vector<8x1xf32>
      %20 = arith.mulf %11, %11 : vector<8x16xf32>
      %cst_14 = arith.constant dense<0.000000e+00> : vector<8xf32>
      %21 = vector.multi_reduction <add>, %20, %cst_14 [1] : vector<8x16xf32> to vector<8xf32>
      %22 = vector.shape_cast %21 : vector<8xf32> to vector<8x1xf32>
      %cst_15 = arith.constant 5.000000e-01 : f32
      %23 = vector.broadcast %cst_15 : f32 to vector<8x1xf32>
      %24 = arith.mulf %23, %22 : vector<8x1xf32>
      %25 = arith.addf %19, %24 : vector<8x1xf32>
      %26 = arith.addf %9, %7 : vector<8x32xf32>
      %cst_16 = arith.constant dense<0.000000e+00> : vector<8x32xf32>
      %27 = tpu.matmul %11, %1, %cst_16 {dimension_numbers = #tpu.dot_dimension_numbers<[1], [0], [0], [1], [0, 0, 1, 1], [], []>, precision = #tpu.contract_precision<fp32>} : vector<8x16xf32>, vector<16x32xf32>, vector<8x32xf32> -> vector<8x32xf32>
      %28 = arith.addf %26, %27 : vector<8x32xf32>
      %c0_17 = arith.constant 0 : index
      %c0_18 = arith.constant 0 : index
      %29 = vector.load %arg10[%c0_17, %c0_18] : memref<8x32xf32, #tpu.memory_space<vmem>>, vector<8x32xf32>
      tpu.vector_store %arg10[%c0_17, %c0_18], %7 {strides = array<i32>} : memref<8x32xf32, #tpu.memory_space<vmem>>, vector<8x32xf32>,
      %c0_19 = arith.constant 0 : index
      %c0_20 = arith.constant 0 : index
      %30 = vector.load %arg11[%c0_19, %c0_20] : memref<8x1xf32, #tpu.memory_space<vmem>>, vector<8x1xf32>
      tpu.vector_store %arg11[%c0_19, %c0_20], %25 {strides = array<i32>} : memref<8x1xf32, #tpu.memory_space<vmem>>, vector<8x1xf32>,
      %c0_21 = arith.constant 0 : index
      %c0_22 = arith.constant 0 : index
      %31 = vector.load %arg12[%c0_21, %c0_22] : memref<8x32xf32, #tpu.memory_space<vmem>>, vector<8x32xf32>
      tpu.vector_store %arg12[%c0_21, %c0_22], %28 {strides = array<i32>} : memref<8x32xf32, #tpu.memory_space<vmem>>, vector<8x32xf32>,
    } else {
    }
    %cst = arith.constant 5.000000e-02 : f32
    %c0_i32_6 = arith.constant 0 : i32
    %c4_i32 = arith.constant 4 : i32
    %6 = arith.addi %c0_i32_6, %c4_i32 : i32
    %c1_i32 = arith.constant 1 : i32
    scf.for %arg13 = %c0_i32_6 to %6 step %c1_i32  : i32 {
      %c1_i32_8 = arith.constant 1 : i32
      %7 = arith.muli %arg13, %c1_i32_8 : i32
      %c0_i32_9 = arith.constant 0 : i32
      %8 = arith.addi %c0_i32_9, %7 : i32
      %c0_10 = arith.constant 0 : index
      %c0_11 = arith.constant 0 : index
      %9 = vector.load %arg10[%c0_10, %c0_11] : memref<8x32xf32, #tpu.memory_space<vmem>>, vector<8x32xf32>
      %c0_12 = arith.constant 0 : index
      %c0_13 = arith.constant 0 : index
      %10 = vector.load %arg11[%c0_12, %c0_13] : memref<8x1xf32, #tpu.memory_space<vmem>>, vector<8x1xf32>
      %c0_14 = arith.constant 0 : index
      %c0_15 = arith.constant 0 : index
      %11 = vector.load %arg12[%c0_14, %c0_15] : memref<8x32xf32, #tpu.memory_space<vmem>>, vector<8x32xf32>
      %12 = arith.index_cast %8 : i32 to index
      %c0_16 = arith.constant 0 : index
      %c0_17 = arith.constant 0 : index
      %13 = vector.load %arg2[%12, %c0_16, %c0_17] : memref<4x8x32xf32, #tpu.memory_space<vmem>>, vector<1x8x32xf32>
      %14 = vector.shape_cast %13 : vector<1x8x32xf32> to vector<8x32xf32>
      %15 = arith.index_cast %8 : i32 to index
      %c0_18 = arith.constant 0 : index
      %c0_19 = arith.constant 0 : index
      %16 = vector.load %arg3[%15, %c0_18, %c0_19] : memref<4x8x1xf32, #tpu.memory_space<vmem>>, vector<1x8x1xf32>
      %17 = vector.shape_cast %16 : vector<1x8x1xf32> to vector<8x1xf32>
      %cst_20 = arith.constant 5.000000e-01 : f32
      %18 = arith.mulf %cst_20, %cst : f32
      %19 = vector.broadcast %18 : f32 to vector<8x32xf32>
      %20 = arith.mulf %19, %11 : vector<8x32xf32>
      %21 = arith.subf %14, %20 : vector<8x32xf32>
      %22 = vector.broadcast %cst : f32 to vector<8x32xf32>
      %23 = arith.mulf %22, %21 : vector<8x32xf32>
      %24 = arith.addf %9, %23 : vector<8x32xf32>
      %cst_21 = arith.constant dense<0.000000e+00> : vector<8x128xf32>
      %25 = tpu.matmul %24, %0, %cst_21 {dimension_numbers = #tpu.dot_dimension_numbers<[1], [0], [0], [1], [0, 0, 1, 1], [], []>, precision = #tpu.contract_precision<fp32>} : vector<8x32xf32>, vector<32x128xf32>, vector<8x128xf32> -> vector<8x128xf32>
      %26 = vector.extract_strided_slice %25 {offsets = [0, 0], sizes = [8, 32], strides = [1, 1]} : vector<8x128xf32> to vector<8x32xf32>
      %27 = vector.extract_strided_slice %25 {offsets = [0, 32], sizes = [8, 16], strides = [1, 1]} : vector<8x128xf32> to vector<8x16xf32>
      %28 = arith.subf %27, %2 : vector<8x16xf32>
      %29 = arith.addf %26, %24 : vector<8x32xf32>
      %cst_22 = arith.constant dense<0.000000e+00> : vector<8x32xf32>
      %30 = tpu.matmul %28, %1, %cst_22 {dimension_numbers = #tpu.dot_dimension_numbers<[1], [0], [0], [1], [0, 0, 1, 1], [], []>, precision = #tpu.contract_precision<fp32>} : vector<8x16xf32>, vector<16x32xf32>, vector<8x32xf32> -> vector<8x32xf32>
      %31 = arith.addf %29, %30 : vector<8x32xf32>
      %32 = vector.broadcast %cst : f32 to vector<8x32xf32>
      %33 = arith.mulf %32, %31 : vector<8x32xf32>
      %34 = arith.subf %21, %33 : vector<8x32xf32>
      %35 = vector.broadcast %cst : f32 to vector<8x32xf32>
      %36 = arith.mulf %35, %34 : vector<8x32xf32>
      %37 = arith.addf %24, %36 : vector<8x32xf32>
      %cst_23 = arith.constant dense<0.000000e+00> : vector<8x128xf32>
      %38 = tpu.matmul %37, %0, %cst_23 {dimension_numbers = #tpu.dot_dimension_numbers<[1], [0], [0], [1], [0, 0, 1, 1], [], []>, precision = #tpu.contract_precision<fp32>} : vector<8x32xf32>, vector<32x128xf32>, vector<8x128xf32> -> vector<8x128xf32>
      %39 = vector.extract_strided_slice %38 {offsets = [0, 0], sizes = [8, 32], strides = [1, 1]} : vector<8x128xf32> to vector<8x32xf32>
      %40 = vector.extract_strided_slice %38 {offsets = [0, 32], sizes = [8, 16], strides = [1, 1]} : vector<8x128xf32> to vector<8x16xf32>
      %41 = arith.subf %40, %2 : vector<8x16xf32>
      %42 = arith.addf %39, %37 : vector<8x32xf32>
      %cst_24 = arith.constant dense<0.000000e+00> : vector<8x32xf32>
      %43 = tpu.matmul %41, %1, %cst_24 {dimension_numbers = #tpu.dot_dimension_numbers<[1], [0], [0], [1], [0, 0, 1, 1], [], []>, precision = #tpu.contract_precision<fp32>} : vector<8x16xf32>, vector<16x32xf32>, vector<8x32xf32> -> vector<8x32xf32>
      %44 = arith.addf %42, %43 : vector<8x32xf32>
      %45 = vector.broadcast %cst : f32 to vector<8x32xf32>
      %46 = arith.mulf %45, %44 : vector<8x32xf32>
      %47 = arith.subf %34, %46 : vector<8x32xf32>
      %48 = vector.broadcast %cst : f32 to vector<8x32xf32>
      %49 = arith.mulf %48, %47 : vector<8x32xf32>
      %50 = arith.addf %37, %49 : vector<8x32xf32>
      %cst_25 = arith.constant dense<0.000000e+00> : vector<8x128xf32>
      %51 = tpu.matmul %50, %0, %cst_25 {dimension_numbers = #tpu.dot_dimension_numbers<[1], [0], [0], [1], [0, 0, 1, 1], [], []>, precision = #tpu.contract_precision<fp32>} : vector<8x32xf32>, vector<32x128xf32>, vector<8x128xf32> -> vector<8x128xf32>
      %52 = vector.extract_strided_slice %51 {offsets = [0, 0], sizes = [8, 32], strides = [1, 1]} : vector<8x128xf32> to vector<8x32xf32>
      %53 = vector.extract_strided_slice %51 {offsets = [0, 32], sizes = [8, 16], strides = [1, 1]} : vector<8x128xf32> to vector<8x16xf32>
      %54 = arith.subf %53, %2 : vector<8x16xf32>
      %55 = arith.addf %52, %50 : vector<8x32xf32>
      %cst_26 = arith.constant dense<0.000000e+00> : vector<8x32xf32>
      %56 = tpu.matmul %54, %1, %cst_26 {dimension_numbers = #tpu.dot_dimension_numbers<[1], [0], [0], [1], [0, 0, 1, 1], [], []>, precision = #tpu.contract_precision<fp32>} : vector<8x16xf32>, vector<16x32xf32>, vector<8x32xf32> -> vector<8x32xf32>
      %57 = arith.addf %55, %56 : vector<8x32xf32>
      %58 = vector.broadcast %cst : f32 to vector<8x32xf32>
      %59 = arith.mulf %58, %57 : vector<8x32xf32>
      %60 = arith.subf %47, %59 : vector<8x32xf32>
      %61 = vector.broadcast %cst : f32 to vector<8x32xf32>
      %62 = arith.mulf %61, %60 : vector<8x32xf32>
      %63 = arith.addf %50, %62 : vector<8x32xf32>
      %cst_27 = arith.constant dense<0.000000e+00> : vector<8x128xf32>
      %64 = tpu.matmul %63, %0, %cst_27 {dimension_numbers = #tpu.dot_dimension_numbers<[1], [0], [0], [1], [0, 0, 1, 1], [], []>, precision = #tpu.contract_precision<fp32>} : vector<8x32xf32>, vector<32x128xf32>, vector<8x128xf32> -> vector<8x128xf32>
      %65 = vector.extract_strided_slice %64 {offsets = [0, 0], sizes = [8, 32], strides = [1, 1]} : vector<8x128xf32> to vector<8x32xf32>
      %66 = vector.extract_strided_slice %64 {offsets = [0, 32], sizes = [8, 16], strides = [1, 1]} : vector<8x128xf32> to vector<8x16xf32>
      %67 = arith.subf %66, %2 : vector<8x16xf32>
      %68 = arith.addf %65, %63 : vector<8x32xf32>
      %cst_28 = arith.constant dense<0.000000e+00> : vector<8x32xf32>
      %69 = tpu.matmul %67, %1, %cst_28 {dimension_numbers = #tpu.dot_dimension_numbers<[1], [0], [0], [1], [0, 0, 1, 1], [], []>, precision = #tpu.contract_precision<fp32>} : vector<8x16xf32>, vector<16x32xf32>, vector<8x32xf32> -> vector<8x32xf32>
      %70 = arith.addf %68, %69 : vector<8x32xf32>
      %71 = vector.broadcast %cst : f32 to vector<8x32xf32>
      %72 = arith.mulf %71, %70 : vector<8x32xf32>
      %73 = arith.subf %60, %72 : vector<8x32xf32>
      %74 = vector.broadcast %cst : f32 to vector<8x32xf32>
      %75 = arith.mulf %74, %73 : vector<8x32xf32>
      %76 = arith.addf %63, %75 : vector<8x32xf32>
      %cst_29 = arith.constant dense<0.000000e+00> : vector<8x128xf32>
      %77 = tpu.matmul %76, %0, %cst_29 {dimension_numbers = #tpu.dot_dimension_numbers<[1], [0], [0], [1], [0, 0, 1, 1], [], []>, precision = #tpu.contract_precision<fp32>} : vector<8x32xf32>, vector<32x128xf32>, vector<8x128xf32> -> vector<8x128xf32>
      %78 = vector.extract_strided_slice %77 {offsets = [0, 0], sizes = [8, 32], strides = [1, 1]} : vector<8x128xf32> to vector<8x32xf32>
      %79 = vector.extract_strided_slice %77 {offsets = [0, 32], sizes = [8, 16], strides = [1, 1]} : vector<8x128xf32> to vector<8x16xf32>
      %80 = arith.subf %79, %2 : vector<8x16xf32>
      %81 = arith.addf %78, %76 : vector<8x32xf32>
      %82 = arith.mulf %81, %76 : vector<8x32xf32>
      %cst_30 = arith.constant dense<0.000000e+00> : vector<8xf32>
      %83 = vector.multi_reduction <add>, %82, %cst_30 [1] : vector<8x32xf32> to vector<8xf32>
      %84 = vector.shape_cast %83 : vector<8xf32> to vector<8x1xf32>
      %cst_31 = arith.constant 5.000000e-01 : f32
      %85 = vector.broadcast %cst_31 : f32 to vector<8x1xf32>
      %86 = arith.mulf %85, %84 : vector<8x1xf32>
      %cst_32 = arith.constant 29.4060326 : f32
      %87 = vector.broadcast %cst_32 : f32 to vector<8x1xf32>
      %88 = arith.addf %86, %87 : vector<8x1xf32>
      %89 = arith.mulf %80, %80 : vector<8x16xf32>
      %cst_33 = arith.constant dense<0.000000e+00> : vector<8xf32>
      %90 = vector.multi_reduction <add>, %89, %cst_33 [1] : vector<8x16xf32> to vector<8xf32>
      %91 = vector.shape_cast %90 : vector<8xf32> to vector<8x1xf32>
      %cst_34 = arith.constant 5.000000e-01 : f32
      %92 = vector.broadcast %cst_34 : f32 to vector<8x1xf32>
      %93 = arith.mulf %92, %91 : vector<8x1xf32>
      %94 = arith.addf %88, %93 : vector<8x1xf32>
      %95 = arith.addf %78, %76 : vector<8x32xf32>
      %cst_35 = arith.constant dense<0.000000e+00> : vector<8x32xf32>
      %96 = tpu.matmul %80, %1, %cst_35 {dimension_numbers = #tpu.dot_dimension_numbers<[1], [0], [0], [1], [0, 0, 1, 1], [], []>, precision = #tpu.contract_precision<fp32>} : vector<8x16xf32>, vector<16x32xf32>, vector<8x32xf32> -> vector<8x32xf32>
      %97 = arith.addf %95, %96 : vector<8x32xf32>
      %cst_36 = arith.constant 5.000000e-01 : f32
      %98 = arith.mulf %cst_36, %cst : f32
      %99 = vector.broadcast %98 : f32 to vector<8x32xf32>
      %100 = arith.mulf %99, %97 : vector<8x32xf32>
      %101 = arith.subf %73, %100 : vector<8x32xf32>
      %102 = arith.mulf %14, %14 : vector<8x32xf32>
      %cst_37 = arith.constant dense<0.000000e+00> : vector<8xf32>
      %103 = vector.multi_reduction <add>, %102, %cst_37 [1] : vector<8x32xf32> to vector<8xf32>
      %104 = vector.shape_cast %103 : vector<8xf32> to vector<8x1xf32>
      %cst_38 = arith.constant 5.000000e-01 : f32
      %105 = vector.broadcast %cst_38 : f32 to vector<8x1xf32>
      %106 = arith.mulf %105, %104 : vector<8x1xf32>
      %107 = arith.mulf %101, %101 : vector<8x32xf32>
      %cst_39 = arith.constant dense<0.000000e+00> : vector<8xf32>
      %108 = vector.multi_reduction <add>, %107, %cst_39 [1] : vector<8x32xf32> to vector<8xf32>
      %109 = vector.shape_cast %108 : vector<8xf32> to vector<8x1xf32>
      %cst_40 = arith.constant 5.000000e-01 : f32
      %110 = vector.broadcast %cst_40 : f32 to vector<8x1xf32>
      %111 = arith.mulf %110, %109 : vector<8x1xf32>
      %112 = arith.addf %10, %106 : vector<8x1xf32>
      %113 = arith.addf %94, %111 : vector<8x1xf32>
      %114 = arith.subf %112, %113 : vector<8x1xf32>
      %115 = arith.cmpf olt, %17, %114 : vector<8x1xf32>
      %116 = vector.shape_cast %115 : vector<8x1xi1> to vector<8x1xi1>
      %117 = vector.broadcast %116 : vector<8x1xi1> to vector<8x32xi1>
      %118 = arith.select %117, %76, %9 : vector<8x32xi1>, vector<8x32xf32>
      %119 = arith.select %115, %94, %10 : vector<8x1xi1>, vector<8x1xf32>
      %120 = vector.shape_cast %115 : vector<8x1xi1> to vector<8x1xi1>
      %121 = vector.broadcast %120 : vector<8x1xi1> to vector<8x32xi1>
      %122 = arith.select %121, %97, %11 : vector<8x32xi1>, vector<8x32xf32>
      %c0_41 = arith.constant 0 : index
      %c0_42 = arith.constant 0 : index
      %123 = vector.load %arg10[%c0_41, %c0_42] : memref<8x32xf32, #tpu.memory_space<vmem>>, vector<8x32xf32>
      tpu.vector_store %arg10[%c0_41, %c0_42], %118 {strides = array<i32>} : memref<8x32xf32, #tpu.memory_space<vmem>>, vector<8x32xf32>,
      %c0_43 = arith.constant 0 : index
      %c0_44 = arith.constant 0 : index
      %124 = vector.load %arg11[%c0_43, %c0_44] : memref<8x1xf32, #tpu.memory_space<vmem>>, vector<8x1xf32>
      tpu.vector_store %arg11[%c0_43, %c0_44], %119 {strides = array<i32>} : memref<8x1xf32, #tpu.memory_space<vmem>>, vector<8x1xf32>,
      %c0_45 = arith.constant 0 : index
      %c0_46 = arith.constant 0 : index
      %125 = vector.load %arg12[%c0_45, %c0_46] : memref<8x32xf32, #tpu.memory_space<vmem>>, vector<8x32xf32>
      tpu.vector_store %arg12[%c0_45, %c0_46], %122 {strides = array<i32>} : memref<8x32xf32, #tpu.memory_space<vmem>>, vector<8x32xf32>,
      %126 = arith.index_cast %8 : i32 to index
      %c0_47 = arith.constant 0 : index
      %c0_48 = arith.constant 0 : index
      %127 = vector.load %arg8[%126, %c0_47, %c0_48] : memref<4x8x32xf32, #tpu.memory_space<vmem>>, vector<1x8x32xf32>
      %128 = vector.shape_cast %127 : vector<1x8x32xf32> to vector<8x32xf32>
      %129 = vector.shape_cast %118 : vector<8x32xf32> to vector<1x8x32xf32>
      tpu.vector_store %arg8[%126, %c0_47, %c0_48], %129 {strides = array<i32>} : memref<4x8x32xf32, #tpu.memory_space<vmem>>, vector<1x8x32xf32>,
      %130 = arith.index_cast %8 : i32 to index
      %c0_49 = arith.constant 0 : index
      %c0_50 = arith.constant 0 : index
      %131 = vector.load %arg9[%130, %c0_49, %c0_50] : memref<4x8x1xf32, #tpu.memory_space<vmem>>, vector<1x8x1xf32>
      %132 = vector.shape_cast %131 : vector<1x8x1xf32> to vector<8x1xf32>
      %133 = vector.shape_cast %119 : vector<8x1xf32> to vector<1x8x1xf32>
      tpu.vector_store %arg9[%130, %c0_49, %c0_50], %133 {strides = array<i32>} : memref<4x8x1xf32, #tpu.memory_space<vmem>>, vector<1x8x1xf32>,
    }
    %c4_i32_7 = arith.constant 4 : i32
    return
  }
  func.func @transform_0(%arg0: i32, %arg1: i32) -> (i32, i32, i32) {
    %c0_i32 = arith.constant 0 : i32
    %c0_i32_0 = arith.constant 0 : i32
    return %arg1, %arg0, %c0_i32 : i32, i32, i32
  }
  func.func @transform_1(%arg0: i32, %arg1: i32) -> (i32, i32, i32) {
    %c0_i32 = arith.constant 0 : i32
    %c0_i32_0 = arith.constant 0 : i32
    return %arg1, %arg0, %c0_i32 : i32, i32, i32
  }
  func.func @transform_2(%arg0: i32, %arg1: i32) -> (i32, i32) {
    %c0_i32 = arith.constant 0 : i32
    %c0_i32_0 = arith.constant 0 : i32
    return %arg0, %c0_i32 : i32, i32
  }
  func.func @transform_3(%arg0: i32, %arg1: i32) -> (i32, i32) {
    %c0_i32 = arith.constant 0 : i32
    %c0_i32_0 = arith.constant 0 : i32
    return %arg0, %c0_i32 : i32, i32
  }
  func.func @transform_4(%arg0: i32, %arg1: i32) -> (i32, i32) {
    %c0_i32 = arith.constant 0 : i32
    %c0_i32_0 = arith.constant 0 : i32
    %c0_i32_1 = arith.constant 0 : i32
    return %c0_i32, %c0_i32_0 : i32, i32
  }
  func.func @transform_5(%arg0: i32, %arg1: i32) -> (i32, i32) {
    %c0_i32 = arith.constant 0 : i32
    %c0_i32_0 = arith.constant 0 : i32
    %c0_i32_1 = arith.constant 0 : i32
    return %c0_i32, %c0_i32_0 : i32, i32
  }
  func.func @transform_6(%arg0: i32, %arg1: i32) -> (i32, i32, i32) {
    %c0_i32 = arith.constant 0 : i32
    %c0_i32_0 = arith.constant 0 : i32
    return %arg1, %arg0, %c0_i32 : i32, i32, i32
  }
  func.func @transform_7(%arg0: i32, %arg1: i32) -> (i32, i32, i32) {
    %c0_i32 = arith.constant 0 : i32
    %c0_i32_0 = arith.constant 0 : i32
    return %arg1, %arg0, %c0_i32 : i32, i32, i32
  }
}

</mosaic_0001>

<bundles_post_ra>
// kernel: _unnamed_function_.1
= control target key start
LH: loop header
LB: loop body
LE: loop exit
PB: predicated region body
PF: predicated region fallthrough
CT: control target
= control target key end

     0   :  { %s8612_s0 = inlined_call_operand.vmem [shape: f32[12,8,32], index: 0, kind: input, shape index: {}]   ;;  %s8613_s1 = inlined_call_operand.vmem [shape: f32[12,8,1], index: 1, kind: input, shape index: {}]   ;;  %s8614_s2 = inlined_call_operand.vmem [shape: f32[8,32], index: 2, kind: input, shape index: {}]   ;;  %s8615_s3 = inlined_call_operand.vmem [shape: f32[8,16], index: 3, kind: input, shape index: {}]   ;;  %s8616_s4 = inlined_call_operand.vmem [shape: f32[32,128], index: 4, kind: input, shape index: {}]   ;;  %s8617_s5 = inlined_call_operand.vmem [shape: f32[16,32], index: 5, kind: input, shape index: {}]   ;;  %s8618_s6 = inlined_call_operand.vmem [shape: f32[12,8,32], index: 6, kind: output, shape index: {0}]   ;;  %s8619_s7 = inlined_call_operand.hbm [shape: f32[12,8,1], index: 7, kind: output, shape index: {1}]  }
   0x1   :  { %8621 = sst [smem:[#allocation8_spill]] %s8612_s0 }
   0x2   :  { %13 = vsyncpa [#allocation6], 0 }
   0x3   :  { %15 = vsyncpa [#allocation6 + $0x1], 0  ;;  %s7616_s24 = smov 0   ;;  %s7618_s25 = smov 0  }
   0x4   :  { %s7620_s26 = smov 0   ;;  %s7622_s27 = smov 0  }
   0x5   :  { %s7624_s28 = smov 0   ;;  %s7626_s29 = smov 0  }
   0x6 LB: > { %s6442_s30 = sadd.s32 4294967295, %s7558_s29   ;;  %s6443_s8 = sadd.s32 4294967294, %s7558_s29   ;;  %s7558_s29 = sphi %s7626_s29, %s21_s29   ;;  %s7554_s28 = sphi %s7624_s28, %s8632_s28   ;;  %s7550_s27 = sphi %s7622_s27, %s8631_s27   ;;  %s7546_s26 = sphi %s7620_s26, %s8630_s26   ;;  %s7542_s25 = sphi %s7618_s25, %s8629_s25   ;;  %s7538_s24 = sphi %s7616_s24, %s8628_s24  }
   0x7   : > { %s30_s9 = sadd.s32 1, %s7554_s28  ;;  %s220_s10 = sadd.s32 1, %s7546_s26 }
   0x8   : > { %p31_p0 = scmp.ge.s32.totalorder %s30_s9, 3  ;;  %p230_p1 = scmp.ne.s32.totalorder %s7546_s26, %s7542_s25 }
   0x9   : > { %p231_p2 = scmp.eq.s32.totalorder %s6442_s30, 2  ;;  %p236_p3 = scmp.ne.s32.totalorder %s7542_s25, %s7538_s24 }
   0xa   : > { %s8634_s9 = smov (%p31_p0, %s30_s9), 0  ;;  %p237_p5 = scmp.eq.s32.totalorder %s6443_s8, 2 }
   0xb   : > { %p7656_p4 = por %p231_p2, %p230_p1  ;;  %s215_s12 = ssub.s32 %s7554_s28, %s8634_s9 }
   0xc   : > { %p6448_p6 = scmp.ge.s32.totalorder %s7558_s29, 1  ;;  %p218_p7 = scmp.eq.s32.totalorder %s215_s12, 0 }
   0xd   : > { %p7663_p8 = por %p237_p5, %p236_p3  ;;  %p299_p9 = scmp.lt.s32.totalorder %s7558_s29, 4 }
   0xe   : > { %s7669_s14 = scalar_select %p218_p7, %s7546_s26, %s220_s10  }
   0xf   : > { %p300_p10 = pnand %p6448_p6, %p299_p9 }
  0x10   : > { %s8620_s15 = sand.u32 (!%p300_p10), 1, %s7542_s25   ;;  %s6450_s16 = sshll.u32 (!%p300_p10), %s7550_s27, 2 }
  0x11   : > { %303 = sbr.rel (%p300_p10) target bundleno = 3741 (0xe9d), region = 44  ;;  %s7690_s23 = sshll.u32 (!%p300_p10), %s8620_s15, 5 }
  0x12   : > { %p359_p11 = scmp.lt.s32.totalorder (!%p300_p10), %s6450_s16, 11  ;;  %s357_s20 = scalar_lea.vmem (!%p300_p10), [#allocation5], %s7690_s23 }
  0x13   : > { %p6456_p12 = scmp.ne.s32.totalorder (!%p300_p10), %s7550_s27, 0 }
  0x16   : > { %v7676_v0 = vld [vmem:[%s8616_s4] sm:$0xff]  ;;  %v7681_v1 = vld [vmem:[%s8616_s4 + $0x8] sm:$0xff]  ;;  %v7686_v2 = vld [vmem:[%s8616_s4 + $0x10] sm:$0xff]  ;;  %s8636_s16 = smov (!%p359_p11, %s6450_s16), 11  ;;  %404 = sbr.rel (%p6456_p12) target bundleno = 595 (0x253), region = 48 }
  0x17   : > { %v7695_v3 = vld [vmem:[%s8616_s4 + $0x18] sm:$0xff]  ;;  %v7700_v4 = vld [vmem:[%s8617_s5] sm:$0xff]  ;;  %v7705_v5 = vld [vmem:[%s8617_s5 + $0x8] sm:$0xff]  ;;  %s7712_s21 = sshll.u32 %s8636_s16, 3  ;;  %s7566_s15 = smov (!%p6456_p12), 32  }
  0x18   : > { %v7710_v6 = vld [vmem:[%s8615_s3] sm:$0xff]  ;;  %s374_s17 = scalar_lea.vmem %s8613_s1, %s7712_s21  ;;  %s391_s19 = scalar_lea.vmem %s8618_s6, %s7712_s21 }
  0x19   : > { %s7567_s30 = smov (!%p6456_p12), 96  }
  0x1b   : > { %v7729_v7 = vand.u32 4294901760, %v7695_v3  ;;  %v7732_v8 = vand.u32 4294901760, %v7686_v2  ;;  %v7735_v9 = vand.u32 4294901760, %v7681_v1  ;;  %v7740_v10 = vld [vmem:[%s8614_s2] sm:$0xff]  ;;  %v7564_v11 = vmov 0.0   ;;  %896 = vrot.lane.b32.xlu0 %v7710_v6, %s7566_s15 }
  0x1c   : > { %6752 = vmatprep.subr.mxu0 %v7564_v11  ;;  %6763 = vmatprep.subr.mxu1 %v7564_v11  ;;  %v7745_v12 = vand.u32 4294901760, %v7676_v0  ;;  %vm406_vm0 = vcmask 261120   ;;  %vm7565_vm1 = vmmov 0   ;;  %v952_v39 = vand.u32 4294901760, %v7705_v5 }
  0x1d   : > { %6753 = vmatpush3.msra.mxu0 %v7729_v7  ;;  %v515_v13 = vsub.f32 %v7695_v3, %v7729_v7  ;;  %6760 = vmatprep.mubr.msk.f32.mxu0 %vm7565_vm1, %v7564_v11  ;;  %v408_v14 = vsel %vm406_vm0, %v7740_v10, 0  ;;  %1383 = vst.msk [vmem:[#allocation2] sm:$0xff] %vm406_vm0, %v7740_v10  ;;  %v522_v15 = vsub.f32 %v7686_v2, %v7732_v8  ;;  %v955_v42 = vand.u32 4294901760, %v7700_v4 }
  0x1e   : > { %v529_v16 = vsub.f32 %v7681_v1, %v7735_v9  ;;  %6754 = vmatprep.subr.mxu0 %v7564_v11  ;;  %v7761_v17 = vand.u32 4294901760, %v408_v14  ;;  %v536_v18 = vsub.f32 %v7676_v0, %v7745_v12  ;;  %6771 = vmatprep.mubr.msk.f32.mxu1 %vm7565_vm1, %v7564_v11  ;;  %v7820_v41 = vsub.f32 %v7705_v5, %v952_v39 }
  0x1f   : > { %6755 = vmatpush3.msra.mxu0 %v7732_v8  ;;  %v516_v19 = vand.u32 4294901760, %v515_v13  ;;  %v523_v20 = vand.u32 4294901760, %v522_v15  ;;  %v7826_v45 = vsub.f32 %v7700_v4, %v955_v42  ;;  %vm912_vm2 = vcmask 130048  }
  0x20   : > { %v530_v21 = vand.u32 4294901760, %v529_v16  ;;  %6756 = vmatprep.subr.mxu0 %v7564_v11  ;;  %v480_v22 = vsub.f32 %v408_v14, %v7761_v17  ;;  %v537_v23 = vand.u32 4294901760, %v536_v18  ;;  %v1031_v44 = vand.u32 4294901760, %v7820_v41 }
  0x21   : > { %6757 = vmatpush3.msra.mxu0 %v7735_v9  ;;  %v517_v24 = vsub.f32 %v515_v13, %v516_v19  ;;  %v524_v25 = vsub.f32 %v522_v15, %v523_v20  ;;  %v1038_v47 = vand.u32 4294901760, %v7826_v45  ;;  %vm1384_vm3 = vcmask 7168  }
  0x22   : > { %v531_v26 = vsub.f32 %v529_v16, %v530_v21  ;;  %6758 = vmatprep.subr.mxu0 %v7564_v11  ;;  %v481_v27 = vand.u32 4294901760, %v480_v22  ;;  %v538_v30 = vsub.f32 %v536_v18, %v537_v23  ;;  %v1032_v46 = vsub.f32 %v7820_v41, %v1031_v44 }
  0x23   : > { %6759 = vmatpush3.msra.mxu0 %v7745_v12  ;;  %v518_v28 = vand.u32 4294901760, %v517_v24  ;;  %v525_v29 = vand.u32 4294901760, %v524_v25  ;;  %v1039_v50 = vsub.f32 %v7826_v45, %v1038_v47 }
  0x24   : > { %6774 = vmatprep.subr.mxu0 %v7564_v11  ;;  %v482_v31 = vsub.f32 %v480_v22, %v481_v27  ;;  %v532_v32 = vand.u32 4294901760, %v531_v26  ;;  %v539_v34 = vand.u32 4294901760, %v538_v30  ;;  %v1033_v49 = vand.u32 4294901760, %v1032_v46 }
  0x25   : > { %6764 = vmatpush3.msra.mxu1 %v518_v28  ;;  %v1040_v52 = vand.u32 4294901760, %v1039_v50 }
  0x26   : > { %6765 = vmatprep.subr.mxu1 %v7564_v11  ;;  %v483_v33 = vand.u32 4294901760, %v482_v31 }
  0x27   : > { %6766 = vmatpush3.msra.mxu1 %v525_v29 }
  0x28   : > { %6761 = vmatmul.mubr.f32.vlgmr.msra.gmra.mxu0 %v483_v33  ;;  %6767 = vmatprep.subr.mxu1 %v7564_v11 }
  0x29   : > { %6775 = vmatpush3.msra.mxu0 %v515_v13  ;;  %6768 = vmatpush3.msra.mxu1 %v532_v32 }
  0x2a   : > { %6776 = vmatprep.subr.mxu0 %v7564_v11  ;;  %6769 = vmatprep.subr.mxu1 %v7564_v11 }
  0x2b   : > { %6777 = vmatpush3.msra.mxu0 %v522_v15  ;;  %6770 = vmatpush3.msra.mxu1 %v539_v34 }
  0x2c   : > { %6778 = vmatprep.subr.mxu0 %v7564_v11  ;;  %6772 = vmatmul.mubr.f32.vlgmr.msra.gmra.mxu1 %v7761_v17 }
  0x2d   : > { %6779 = vmatpush3.msra.mxu0 %v529_v16  ;;  %6785 = vmatprep.subr.mxu1 %v7564_v11 }
  0x2e   : > { %6780 = vmatprep.subr.mxu0 %v7564_v11  ;;  %6782 = vmatprep.mubr.msk.f32.mxu0 %vm7565_vm1, %v7564_v11 }
  0x2f   : > { %6781 = vmatpush3.msra.mxu0 %v536_v18  ;;  %6786 = vmatpush3.msra.mxu1 %v7729_v7 }
  0x30   : > { %6783 = vmatmul.mubr.f32.vlgmr.msra.gmra.mxu0 %v480_v22  ;;  %6787 = vmatprep.subr.mxu1 %v7564_v11 }
  0x31   : > { %6796 = vmatprep.subr.mxu0 %v7564_v11  ;;  %6788 = vmatpush3.msra.mxu1 %v7732_v8 }
  0x32   : > { %6797 = vmatpush3.msra.mxu0 %v516_v19  ;;  %6789 = vmatprep.subr.mxu1 %v7564_v11 }
  0x33   : > { %6798 = vmatprep.subr.mxu0 %v7564_v11  ;;  %6790 = vmatpush3.msra.mxu1 %v7735_v9 }
  0x34   : > { %6799 = vmatpush3.msra.mxu0 %v523_v20  ;;  %6791 = vmatprep.subr.mxu1 %v7564_v11 }
  0x35   : > { %6800 = vmatprep.subr.mxu0 %v7564_v11  ;;  %6792 = vmatpush3.msra.mxu1 %v7745_v12 }
  0x36   : > { %6793 = vmatprep.mubr.msk.f32.mxu1 %vm7565_vm1, %v7564_v11  ;;  %6801 = vmatpush3.msra.mxu0 %v530_v21 }
  0x37   : > { %6794 = vmatmul.mubr.f32.vlgmr.msra.gmra.mxu1 %v481_v27  ;;  %6802 = vmatprep.subr.mxu0 %v7564_v11 }
  0x38   : > { %6807 = vmatprep.subr.mxu1 %v7564_v11  ;;  %6803 = vmatpush3.msra.mxu0 %v537_v23 }
  0x39   : > { %6804 = vmatprep.mubr.msk.f32.mxu0 %vm7565_vm1, %v7564_v11  ;;  %6808 = vmatpush3.msra.mxu1 %v7729_v7 }
  0x3a   : > { %6805 = vmatmul.mubr.f32.vlgmr.msra.gmra.mxu0 %v7761_v17  ;;  %6809 = vmatprep.subr.mxu1 %v7564_v11 }
  0x3b   : > { %6810 = vmatpush3.msra.mxu1 %v7732_v8  ;;  %6815 = vmatprep.mubr.msk.f32.mxu1 %vm7565_vm1, %v7564_v11 }
  0x3c   : > { %6811 = vmatprep.subr.mxu1 %v7564_v11  ;;  %6818 = vmatprep.subr.mxu0 %v7564_v11 }
  0x3d   : > { %6812 = vmatpush3.msra.mxu1 %v7735_v9  ;;  %6822 = vmatprep.mubr.msk.f32.mxu0 %vm7565_vm1, %v7564_v11 }
  0x3e   : > { %6813 = vmatprep.subr.mxu1 %v7564_v11  ;;  %6819 = vmatpush3.msra.mxu0 %v952_v39 }
  0x3f   : > { %6814 = vmatpush3.msra.mxu1 %v7745_v12  ;;  %6820 = vmatprep.subr.mxu0 %v7564_v11 }
  0x40   : > { %6816 = vmatmul.mubr.f32.vlgmr.msra.gmra.mxu1 %v7761_v17  ;;  %6825 = vmatprep.subr.mxu1 %v7564_v11 }
  0x41   : > { %6829 = vmatprep.mubr.msk.f32.mxu1 %vm7565_vm1, %v7564_v11  ;;  %6821 = vmatpush3.msra.mxu0 %v955_v42 }
  0x42   : > { %6832 = vmatprep.subr.mxu0 %v7564_v11  ;;  %6826 = vmatpush3.msra.mxu1 %v1033_v49 }
  0x43   : > { %6827 = vmatprep.subr.mxu1 %v7564_v11 }
  0x44   : > { %6828 = vmatpush3.msra.mxu1 %v1040_v52 }
  0x45   : > { %6839 = vmatprep.subr.mxu1 %v7564_v11 }
  0x8d   : > { %v897_v60 = vpop.permute.xlu0 %896 }
  0xe8   : > { %v485_v35 = vpop.f32.mrf.mxu0 }
  0xea   : > { %v6762_v36 = vpop.f32.mrf.mxu0 }
  0xec   : > { %v576_v37 = vpop.f32.mrf.mxu1 }
  0xed   : > { %v577_v48 = vadd.f32 %v576_v37, %v485_v35 }
  0xee   : > { %v6773_v38 = vpop.f32.mrf.mxu1 }
  0xf0   : > { %v656_v40 = vpop.f32.mrf.mxu0 }
  0xf1   : > { %v657_v53 = vadd.f32 %v656_v40, %v577_v48 }
  0xf2   : > { %v6784_v43 = vpop.f32.mrf.mxu0 }
  0xf7   : > { %v733_v51 = vpop.f32.mrf.mxu1 }
  0xf8   : > { %v734_v56 = vadd.f32 %v733_v51, %v657_v53 }
  0xf9   : > { %v6795_v54 = vpop.f32.mrf.mxu1 }
  0xfa   : > { %v816_v55 = vpop.f32.mrf.mxu0 }
  0xfb   : > { %v817_v58 = vadd.f32 %v816_v55, %v734_v56 }
  0xfc   : > { %v6806_v57 = vpop.f32.mrf.mxu0 }
 0x100   : > { %v891_v59 = vpop.f32.mrf.mxu1 }
 0x101   : > { %v892_v61 = vadd.f32 %v891_v59, %v817_v58 }
 0x102   : > { %v6817_v62 = vpop.f32.mrf.mxu1 }
 0x103   : > { %v899_v63 = vsub.f32 %v892_v61, %v897_v60  ;;  %v7837_v8 = vadd.f32 %v892_v61, %v7740_v10 }
 0x105   : > { %919 = vrot.lane.b32.xlu0 %v899_v63, %s7567_s30  ;;  %v907_v7 = vmul.f32 %v899_v63, %v899_v63  ;;  %v901_v9 = vmul.f32 %v7837_v8, %v7740_v10 }
 0x107   : > { %909 = vrot.lane.b32.xlu1 %v907_v7, %s7567_s30  ;;  %v902_v12 = vsel %vm406_vm0, %v901_v9, 0.0 }
 0x12b   : > { %903 = vadd.xlane.f32.xlu1 %v902_v12 }
 0x177   : > { %v920_v13 = vpop.permute.xlu0 %919 }
 0x178   : > { %v921_v14 = vsel %vm912_vm2, %v920_v13, 0 }
 0x179   : > { %v990_v15 = vand.u32 4294901760, %v921_v14  ;;  %v910_v16 = vpop.permute.xlu1 %909 }
 0x17a   : > { %v913_v17 = vsel %vm912_vm2, %v910_v16, 0.0 }
 0x17b   : > { %v991_v18 = vsub.f32 %v921_v14, %v990_v15  ;;  %6830 = vmatmul.mubr.f32.vlgmr.msra.gmra.mxu1 %v990_v15  ;;  %914 = vadd.xlane.f32.xlu0 %v913_v17 }
 0x17c   : > { %6840 = vmatpush3.msra.mxu1 %v952_v39  ;;  %6843 = vmatprep.mubr.msk.f32.mxu1 %vm7565_vm1, %v7564_v11 }
 0x17d   : > { %v992_v19 = vand.u32 4294901760, %v991_v18  ;;  %6841 = vmatprep.subr.mxu1 %v7564_v11 }
 0x17e   : > { %6842 = vmatpush3.msra.mxu1 %v955_v42 }
 0x17f   : > { %v993_v10 = vsub.f32 %v991_v18, %v992_v19  ;;  %6844 = vmatmul.mubr.f32.vlgmr.msra.gmra.mxu1 %v992_v19  ;;  %6853 = vmatprep.subr.mxu1 %v7564_v11 }
 0x180   : > { %6854 = vmatpush3.msra.mxu1 %v952_v39  ;;  %6857 = vmatprep.mubr.msk.f32.mxu1 %vm7565_vm1, %v7564_v11 }
 0x181   : > { %v994_v20 = vand.u32 4294901760, %v993_v10  ;;  %6855 = vmatprep.subr.mxu1 %v7564_v11 }
 0x182   : > { %6856 = vmatpush3.msra.mxu1 %v955_v42 }
 0x183   : > { %6823 = vmatmul.mubr.f32.vlgmr.msra.gmra.mxu0 %v994_v20  ;;  %6858 = vmatmul.mubr.f32.vlgmr.msra.gmra.mxu1 %v990_v15 }
 0x184   : > { %6833 = vmatpush3.msra.mxu0 %v7820_v41  ;;  %6836 = vmatprep.mubr.msk.f32.mxu0 %vm7565_vm1, %v7564_v11 }
 0x185   : > { %6834 = vmatprep.subr.mxu0 %v7564_v11 }
 0x186   : > { %6835 = vmatpush3.msra.mxu0 %v7826_v45 }
 0x187   : > { %6846 = vmatprep.subr.mxu0 %v7564_v11  ;;  %6837 = vmatmul.mubr.f32.vlgmr.msra.gmra.mxu0 %v991_v18 }
 0x188   : > { %6847 = vmatpush3.msra.mxu0 %v1031_v44  ;;  %6850 = vmatprep.mubr.msk.f32.mxu0 %vm7565_vm1, %v7564_v11 }
 0x189   : > { %6848 = vmatprep.subr.mxu0 %v7564_v11 }
 0x18a   : > { %6849 = vmatpush3.msra.mxu0 %v1038_v47 }
 0x18b   : > { %6851 = vmatmul.mubr.f32.vlgmr.msra.gmra.mxu0 %v990_v15 }
 0x1b4   : > { %v904_v21 = vpop.xlane.xlu1 %903 }
 0x1b5   : > { %v905_v22 = vmul.f32 0.5, %v904_v21 }
 0x1b7   : > { %v906_v24 = vadd.f32 29.406033, %v905_v22 }
 0x204   : > { %v915_v23 = vpop.xlane.xlu0 %914 }
 0x205   : > { %v916_v25 = vmul.f32 0.5, %v915_v23 }
 0x207   : > { %v917_v26 = vadd.f32 %v916_v25, %v906_v24 }
 0x209   : > { %1385 = vst.msk [vmem:[#allocation3] sm:$0xff] %vm1384_vm3, %v917_v26 }
 0x23b   : > { %v1077_v27 = vpop.f32.mrf.mxu1 }
 0x23d   : > { %v6831_v28 = vpop.f32.mrf.mxu1 }
 0x23f   : > { %v1228_v29 = vpop.f32.mrf.mxu1 }
 0x241   : > { %v6845_v30 = vpop.f32.mrf.mxu1 }
 0x243   : > { %v996_v31 = vpop.f32.mrf.mxu0  ;;  %v1378_v32 = vpop.f32.mrf.mxu1 }
 0x244   : > { %v1078_v35 = vadd.f32 %v1077_v27, %v996_v31 }
 0x245   : > { %v6824_v33 = vpop.f32.mrf.mxu0  ;;  %v6859_v34 = vpop.f32.mrf.mxu1 }
 0x247   : > { %v1153_v11 = vpop.f32.mrf.mxu0 }
 0x248   : > { %v1154_v36 = vadd.f32 %v1153_v11, %v1078_v35 }
 0x249   : > { %v6838_v37 = vpop.f32.mrf.mxu0 }
 0x24a   : > { %v1229_v38 = vadd.f32 %v1228_v29, %v1154_v36 }
 0x24b   : > { %v1305_v39 = vpop.f32.mrf.mxu0 }
 0x24c   : > { %v1306_v40 = vadd.f32 %v1305_v39, %v1229_v38 }
 0x24d   : > { %v6852_v41 = vpop.f32.mrf.mxu0 }
 0x24e   : > { %v1379_v42 = vadd.f32 %v1378_v32, %v1306_v40 }
 0x250   : > { %v1382_v43 = vadd.f32 %v1379_v42, %v7837_v8 }
 0x252   : > { %1386 = vst.msk [vmem:[#allocation4] sm:$0xff] %vm406_vm0, %v1382_v43 }
 0x253 PF: > { %s7862_s10 = smov 0  }
 0x254 LB: >> { %v7868_v44 = vand.u32 4294901760, %v7695_v3  ;;  %v7871_v45 = vand.u32 4294901760, %v7686_v2  ;;  %v7874_v46 = vand.u32 4294901760, %v7681_v1  ;;  %v7568_v48 = vmov 0.0   ;;  %s7897_s12 = sshll.u32 %s7562_s10, 3  ;;  %s8625_s0 = sld [smem:[#allocation8_spill]]  ;;  %s7562_s10 = sphi %s7862_s10, %s1392_s10  }
 0x255   : >> { %6860 = vmatprep.subr.mxu0 %v7568_v48  ;;  %6871 = vmatprep.subr.mxu1 %v7568_v48  ;;  %v7879_v49 = vand.u32 4294901760, %v7676_v0  ;;  %vm7569_vm4 = vmmov 0   ;;  %s7570_s15 = smov 32   ;;  %v1393_v7 = vld [vmem:[#allocation2] sm:$0xff]  ;;  %vm1405_vm5 = vcmask 261120   ;;  %v8010_v25 = vand.u32 4294901760, %v7705_v5 }
 0x256   : >> { %6861 = vmatpush3.msra.mxu0 %v7868_v44  ;;  %v7884_v51 = vsub.f32 %v7695_v3, %v7868_v44  ;;  %v7888_v52 = vsub.f32 %v7686_v2, %v7871_v45  ;;  %v7892_v53 = vsub.f32 %v7681_v1, %v7874_v46  ;;  %6868 = vmatprep.mubr.msk.f32.mxu0 %vm7569_vm4, %v7568_v48  ;;  %v8017_v28 = vand.u32 4294901760, %v7700_v4  ;;  %s7571_s30 = smov 96   ;;  %s1392_s10 = sadd.s32 1, %s7562_s10  }
 0x257   : >> { %6862 = vmatprep.subr.mxu0 %v7568_v48  ;;  %v7902_v54 = vsub.f32 %v7676_v0, %v7879_v49  ;;  %6879 = vmatprep.mubr.msk.f32.mxu1 %vm7569_vm4, %v7568_v48  ;;  %v8014_v27 = vsub.f32 %v7705_v5, %v8010_v25  ;;  %vm1903_vm6 = vcmask 130048   ;;  %vm6243_vm7 = vcmask 7168   ;;  %p1389_p13 = scmp.ge.s32.totalorder %s1392_s10, 4  }
 0x258   : >> { %v7915_v55 = vand.u32 4294901760, %v7884_v51  ;;  %6863 = vmatpush3.msra.mxu0 %v7871_v45  ;;  %v7919_v56 = vand.u32 4294901760, %v7888_v52  ;;  %v7922_v57 = vand.u32 4294901760, %v7892_v53  ;;  %1895 = vrot.lane.b32.xlu0 %v7710_v6, %s7570_s15  ;;  %v8026_v30 = vsub.f32 %v7700_v4, %v8017_v28  ;;  %s6248_s15 = scalar_lea.vmem %s357_s20, %s7897_s12 [#allocation5] }
 0x259   : >> { %v1395_v47 = vld [vmem:[#allocation4] sm:$0xff]  ;;  %6864 = vmatprep.subr.mxu0 %v7568_v48  ;;  %v7928_v59 = vand.u32 4294901760, %v7902_v54  ;;  %v8022_v29 = vand.u32 4294901760, %v8014_v27 }
 0x25a   : >> { %v1401_v50 = vmul.f32 0.025, %v1395_v47  ;;  %s8626_s8 = scalar_lea.vmem %s8625_s0, %s7712_s21  ;;  %v1516_v61 = vsub.f32 %v7884_v51, %v7915_v55  ;;  %v1523_v62 = vsub.f32 %v7888_v52, %v7919_v56  ;;  %6865 = vmatpush3.msra.mxu0 %v7874_v46  ;;  %v1530_v63 = vsub.f32 %v7892_v53, %v7922_v57  ;;  %s6246_s0 = scalar_lea.vmem %s391_s19, %s7897_s12 }
 0x25b   : >> { %s7912_s22 = scalar_lea.vmem %s8626_s8, %s7897_s12  ;;  %6866 = vmatprep.subr.mxu0 %v7568_v48  ;;  %v1537_v13 = vsub.f32 %v7902_v54, %v7928_v59  ;;  %v2015_v32 = vsub.f32 %v8014_v27, %v8022_v29  ;;  %v8033_v33 = vand.u32 4294901760, %v8026_v30  ;;  %s6463_s8 = sshll.u32 (%p1389_p13), %s7550_s27, 9 }
 0x25c   : >> { %v1398_v58 = vld [vmem:[%s7912_s22] sm:$0xff]  ;;  %v7941_v9 = vand.u32 4294901760, %v1516_v61  ;;  %v7943_v12 = vand.u32 4294901760, %v1523_v62  ;;  %6867 = vmatpush3.msra.mxu0 %v7879_v49  ;;  %v7952_v15 = vand.u32 4294901760, %v1530_v63  ;;  %s8559_s16 = scalar_lea.hbm (%p1389_p13), %s8619_s7, %s6463_s8  ;;  %s7573_s27 = smov (%p1389_p13), [#allocation5]  }
 0x25d   : >> { %v7930_v60 = vsub.f32 %v1398_v58, %v1401_v50  ;;  %6882 = vmatprep.subr.mxu0 %v7568_v48  ;;  %v7958_v17 = vand.u32 4294901760, %v1537_v13  ;;  %v8035_v11 = vand.u32 4294901760, %v2015_v32  ;;  %v2022_v36 = vsub.f32 %v8026_v30, %v8033_v33 }
 0x25e   : >> { %6872 = vmatpush3.msra.mxu1 %v7941_v9 }
 0x25f   : >> { %v1403_v8 = vmul.f32 0.05, %v7930_v60  ;;  %6873 = vmatprep.subr.mxu1 %v7568_v48  ;;  %v8040_v39 = vand.u32 4294901760, %v2022_v36 }
 0x260   : >> { %6874 = vmatpush3.msra.mxu1 %v7943_v12 }
 0x261   : >> { %v7949_v14 = vadd.f32 %v1403_v8, %v1393_v7  ;;  %6875 = vmatprep.subr.mxu1 %v7568_v48 }
 0x262   : >> { %6876 = vmatpush3.msra.mxu1 %v7952_v15 }
 0x263   : >> { %v1407_v16 = vsel %vm1405_vm5, %v7949_v14, 0  ;;  %6877 = vmatprep.subr.mxu1 %v7568_v48 }
 0x264   : >> { %v1478_v18 = vand.u32 4294901760, %v1407_v16  ;;  %6878 = vmatpush3.msra.mxu1 %v7958_v17 }
 0x265   : >> { %6893 = vmatprep.subr.mxu1 %v7568_v48 }
 0x266   : >> { %v1479_v19 = vsub.f32 %v1407_v16, %v1478_v18  ;;  %6880 = vmatmul.mubr.f32.vlgmr.msra.gmra.mxu1 %v1478_v18 }
 0x267   : >> { %6894 = vmatpush3.msra.mxu1 %v7868_v44  ;;  %6901 = vmatprep.mubr.msk.f32.mxu1 %vm7569_vm4, %v7568_v48 }
 0x268   : >> { %v1480_v10 = vand.u32 4294901760, %v1479_v19  ;;  %6895 = vmatprep.subr.mxu1 %v7568_v48 }
 0x269   : >> { %6896 = vmatpush3.msra.mxu1 %v7871_v45 }
 0x26a   : >> { %v1481_v20 = vsub.f32 %v1479_v19, %v1480_v10  ;;  %6897 = vmatprep.subr.mxu1 %v7568_v48 }
 0x26b   : >> { %6898 = vmatpush3.msra.mxu1 %v7874_v46 }
 0x26c   : >> { %v1482_v21 = vand.u32 4294901760, %v1481_v20  ;;  %6899 = vmatprep.subr.mxu1 %v7568_v48 }
 0x26d   : >> { %6900 = vmatpush3.msra.mxu1 %v7879_v49 }
 0x26e   : >> { %6869 = vmatmul.mubr.f32.vlgmr.msra.gmra.mxu0 %v1482_v21  ;;  %6915 = vmatprep.subr.mxu1 %v7568_v48 }
 0x26f   : >> { %6883 = vmatpush3.msra.mxu0 %v7884_v51  ;;  %6890 = vmatprep.mubr.msk.f32.mxu0 %vm7569_vm4, %v7568_v48 }
 0x270   : >> { %6884 = vmatprep.subr.mxu0 %v7568_v48  ;;  %6902 = vmatmul.mubr.f32.vlgmr.msra.gmra.mxu1 %v1480_v10 }
 0x271   : >> { %6885 = vmatpush3.msra.mxu0 %v7888_v52  ;;  %6916 = vmatpush3.msra.mxu1 %v7868_v44 }
 0x272   : >> { %6886 = vmatprep.subr.mxu0 %v7568_v48  ;;  %6917 = vmatprep.subr.mxu1 %v7568_v48 }
 0x273   : >> { %6887 = vmatpush3.msra.mxu0 %v7892_v53  ;;  %6918 = vmatpush3.msra.mxu1 %v7871_v45 }
 0x274   : >> { %6888 = vmatprep.subr.mxu0 %v7568_v48  ;;  %6919 = vmatprep.subr.mxu1 %v7568_v48 }
 0x275   : >> { %6889 = vmatpush3.msra.mxu0 %v7902_v54  ;;  %6920 = vmatpush3.msra.mxu1 %v7874_v46 }
 0x276   : >> { %6891 = vmatmul.mubr.f32.vlgmr.msra.gmra.mxu0 %v1479_v19  ;;  %6904 = vmatprep.subr.mxu0 %v7568_v48 }
 0x277   : >> { %6905 = vmatpush3.msra.mxu0 %v7915_v55  ;;  %6921 = vmatprep.subr.mxu1 %v7568_v48 }
 0x278   : >> { %6906 = vmatprep.subr.mxu0 %v7568_v48  ;;  %6912 = vmatprep.mubr.msk.f32.mxu0 %vm7569_vm4, %v7568_v48 }
 0x279   : >> { %6907 = vmatpush3.msra.mxu0 %v7919_v56  ;;  %6922 = vmatpush3.msra.mxu1 %v7879_v49 }
 0x27a   : >> { %6908 = vmatprep.subr.mxu0 %v7568_v48  ;;  %6923 = vmatprep.mubr.msk.f32.mxu1 %vm7569_vm4, %v7568_v48 }
 0x27b   : >> { %6909 = vmatpush3.msra.mxu0 %v7922_v57  ;;  %6924 = vmatmul.mubr.f32.vlgmr.msra.gmra.mxu1 %v1478_v18 }
 0x27c   : >> { %6910 = vmatprep.subr.mxu0 %v7568_v48  ;;  %6933 = vmatprep.subr.mxu1 %v7568_v48 }
 0x27d   : >> { %6911 = vmatpush3.msra.mxu0 %v7928_v59  ;;  %6937 = vmatprep.mubr.msk.f32.mxu1 %vm7569_vm4, %v7568_v48 }
 0x27e   : >> { %6913 = vmatmul.mubr.f32.vlgmr.msra.gmra.mxu0 %v1478_v18  ;;  %6926 = vmatprep.subr.mxu0 %v7568_v48 }
 0x27f   : >> { %6930 = vmatprep.mubr.msk.f32.mxu0 %vm7569_vm4, %v7568_v48  ;;  %6927 = vmatpush3.msra.mxu0 %v8010_v25 }
 0x280   : >> { %6928 = vmatprep.subr.mxu0 %v7568_v48  ;;  %6934 = vmatpush3.msra.mxu1 %v8035_v11 }
 0x281   : >> { %6929 = vmatpush3.msra.mxu0 %v8017_v28  ;;  %6935 = vmatprep.subr.mxu1 %v7568_v48 }
 0x282   : >> { %6940 = vmatprep.subr.mxu0 %v7568_v48  ;;  %6936 = vmatpush3.msra.mxu1 %v8040_v39 }
 0x283   : >> { %6947 = vmatprep.subr.mxu1 %v7568_v48 }
 0x2ca   : >> { %v8045_v50 = vpop.permute.xlu0 %1895 }
 0x326   : >> { %v1575_v22 = vpop.f32.mrf.mxu1 }
 0x328   : >> { %v6881_v23 = vpop.f32.mrf.mxu1 }
 0x32e   : >> { %v1484_v24 = vpop.f32.mrf.mxu0 }
 0x32f   : >> { %v1576_v37 = vadd.f32 %v1575_v22, %v1484_v24 }
 0x330   : >> { %v6870_v26 = vpop.f32.mrf.mxu0  ;;  %v1732_v31 = vpop.f32.mrf.mxu1 }
 0x332   : >> { %v6903_v34 = vpop.f32.mrf.mxu1 }
 0x336   : >> { %v1655_v35 = vpop.f32.mrf.mxu0 }
 0x337   : >> { %v1656_v40 = vadd.f32 %v1655_v35, %v1576_v37 }
 0x338   : >> { %v6892_v38 = vpop.f32.mrf.mxu0 }
 0x339   : >> { %v1733_v41 = vadd.f32 %v1732_v31, %v1656_v40 }
 0x33b   : >> { %v1890_v43 = vpop.f32.mrf.mxu1 }
 0x33d   : >> { %v6925_v61 = vpop.f32.mrf.mxu1 }
 0x33e   : >> { %v1815_v42 = vpop.f32.mrf.mxu0 }
 0x33f   : >> { %v1816_v47 = vadd.f32 %v1815_v42, %v1733_v41 }
 0x340   : >> { %v6914_v58 = vpop.f32.mrf.mxu0 }
 0x341   : >> { %v8047_v62 = vadd.f32 %v1890_v43, %v1816_v47 }
 0x343   : >> { %v1898_v63 = vsub.f32 %v8047_v62, %v8045_v50  ;;  %v1899_v43 = vadd.f32 %v8047_v62, %v7949_v14 }
 0x345   : >> { %1901 = vrot.lane.b32.xlu0 %v1898_v63, %s7571_s30 }
 0x3b7   : >> { %v1902_v7 = vpop.permute.xlu0 %1901 }
 0x3b8   : >> { %v1904_v8 = vsel %vm1903_vm6, %v1902_v7, 0 }
 0x3b9   : >> { %v1973_v13 = vand.u32 4294901760, %v1904_v8 }
 0x3bb   : >> { %v1974_v16 = vsub.f32 %v1904_v8, %v1973_v13  ;;  %6938 = vmatmul.mubr.f32.vlgmr.msra.gmra.mxu1 %v1973_v13 }
 0x3bc   : >> { %6948 = vmatpush3.msra.mxu1 %v8010_v25  ;;  %6951 = vmatprep.mubr.msk.f32.mxu1 %vm7569_vm4, %v7568_v48 }
 0x3bd   : >> { %v1975_v18 = vand.u32 4294901760, %v1974_v16  ;;  %6949 = vmatprep.subr.mxu1 %v7568_v48 }
 0x3be   : >> { %6950 = vmatpush3.msra.mxu1 %v8017_v28 }
 0x3bf   : >> { %v1976_v19 = vsub.f32 %v1974_v16, %v1975_v18  ;;  %6952 = vmatmul.mubr.f32.vlgmr.msra.gmra.mxu1 %v1975_v18  ;;  %6961 = vmatprep.subr.mxu1 %v7568_v48 }
 0x3c0   : >> { %6962 = vmatpush3.msra.mxu1 %v8010_v25  ;;  %6965 = vmatprep.mubr.msk.f32.mxu1 %vm7569_vm4, %v7568_v48 }
 0x3c1   : >> { %v1977_v10 = vand.u32 4294901760, %v1976_v19  ;;  %6963 = vmatprep.subr.mxu1 %v7568_v48 }
 0x3c2   : >> { %6964 = vmatpush3.msra.mxu1 %v8017_v28 }
 0x3c3   : >> { %6931 = vmatmul.mubr.f32.vlgmr.msra.gmra.mxu0 %v1977_v10  ;;  %6966 = vmatmul.mubr.f32.vlgmr.msra.gmra.mxu1 %v1973_v13 }
 0x3c4   : >> { %6941 = vmatpush3.msra.mxu0 %v8014_v27  ;;  %6944 = vmatprep.mubr.msk.f32.mxu0 %vm7569_vm4, %v7568_v48 }
 0x3c5   : >> { %6942 = vmatprep.subr.mxu0 %v7568_v48  ;;  %6979 = vmatprep.subr.mxu1 %v7568_v48 }
 0x3c6   : >> { %6943 = vmatpush3.msra.mxu0 %v8026_v30  ;;  %6980 = vmatpush3.msra.mxu1 %v7941_v9 }
 0x3c7   : >> { %6954 = vmatprep.subr.mxu0 %v7568_v48  ;;  %6945 = vmatmul.mubr.f32.vlgmr.msra.gmra.mxu0 %v1974_v16 }
 0x3c8   : >> { %6955 = vmatpush3.msra.mxu0 %v8022_v29  ;;  %6958 = vmatprep.mubr.msk.f32.mxu0 %vm7569_vm4, %v7568_v48 }
 0x3c9   : >> { %6956 = vmatprep.subr.mxu0 %v7568_v48  ;;  %6981 = vmatprep.subr.mxu1 %v7568_v48 }
 0x3ca   : >> { %6957 = vmatpush3.msra.mxu0 %v8033_v33  ;;  %6982 = vmatpush3.msra.mxu1 %v7943_v12 }
 0x3cb   : >> { %6959 = vmatmul.mubr.f32.vlgmr.msra.gmra.mxu0 %v1973_v13  ;;  %6983 = vmatprep.subr.mxu1 %v7568_v48 }
 0x3cc   : >> { %6984 = vmatpush3.msra.mxu1 %v7952_v15  ;;  %6968 = vmatprep.subr.mxu0 %v7568_v48 }
 0x3cd   : >> { %6985 = vmatprep.subr.mxu1 %v7568_v48  ;;  %6987 = vmatprep.mubr.msk.f32.mxu1 %vm7569_vm4, %v7568_v48 }
 0x3ce   : >> { %6986 = vmatpush3.msra.mxu1 %v7958_v17  ;;  %6969 = vmatpush3.msra.mxu0 %v7868_v44 }
 0x3cf   : >> { %7001 = vmatprep.subr.mxu1 %v7568_v48  ;;  %6970 = vmatprep.subr.mxu0 %v7568_v48 }
 0x3d0   : >> { %6971 = vmatpush3.msra.mxu0 %v7871_v45  ;;  %6976 = vmatprep.mubr.msk.f32.mxu0 %vm7569_vm4, %v7568_v48 }
 0x3d1   : >> { %6972 = vmatprep.subr.mxu0 %v7568_v48 }
 0x3d2   : >> { %6973 = vmatpush3.msra.mxu0 %v7874_v46 }
 0x3d3   : >> { %6974 = vmatprep.subr.mxu0 %v7568_v48 }
 0x3d4   : >> { %6975 = vmatpush3.msra.mxu0 %v7879_v49 }
 0x3d5   : >> { %6990 = vmatprep.subr.mxu0 %v7568_v48 }
 0x47b   : >> { %v2060_v20 = vpop.f32.mrf.mxu1 }
 0x47d   : >> { %v6939_v21 = vpop.f32.mrf.mxu1 }
 0x47f   : >> { %v2211_v22 = vpop.f32.mrf.mxu1 }
 0x481   : >> { %v6953_v23 = vpop.f32.mrf.mxu1 }
 0x483   : >> { %v1979_v24 = vpop.f32.mrf.mxu0  ;;  %v2361_v26 = vpop.f32.mrf.mxu1 }
 0x484   : >> { %v2061_v34 = vadd.f32 %v2060_v20, %v1979_v24 }
 0x485   : >> { %v6932_v31 = vpop.f32.mrf.mxu0  ;;  %v6967_v32 = vpop.f32.mrf.mxu1 }
 0x487   : >> { %v2136_v35 = vpop.f32.mrf.mxu0 }
 0x488   : >> { %v2137_v36 = vadd.f32 %v2136_v35, %v2061_v34 }
 0x489   : >> { %v6946_v37 = vpop.f32.mrf.mxu0 }
 0x48a   : >> { %v2212_v38 = vadd.f32 %v2211_v22, %v2137_v36 }
 0x48b   : >> { %v2288_v40 = vpop.f32.mrf.mxu0 }
 0x48c   : >> { %v2289_v41 = vadd.f32 %v2288_v40, %v2212_v38 }
 0x48d   : >> { %v6960_v42 = vpop.f32.mrf.mxu0 }
 0x48e   : >> { %v2362_v47 = vadd.f32 %v2361_v26, %v2289_v41 }
 0x490   : >> { %v2365_v58 = vadd.f32 %v2362_v47, %v1899_v43 }
 0x492   : >> { %v2366_v61 = vmul.f32 0.05, %v2365_v58 }
 0x494   : >> { %v8100_v63 = vsub.f32 %v7930_v60, %v2366_v61 }
 0x496   : >> { %v2368_v7 = vmul.f32 0.05, %v8100_v63 }
 0x498   : >> { %v8104_v8 = vadd.f32 %v2368_v7, %v7949_v14 }
 0x49a   : >> { %v2371_v13 = vsel %vm1405_vm5, %v8104_v8, 0 }
 0x49b   : >> { %v2442_v16 = vand.u32 4294901760, %v2371_v13 }
 0x49d   : >> { %v2443_v18 = vsub.f32 %v2371_v13, %v2442_v16  ;;  %6988 = vmatmul.mubr.f32.vlgmr.msra.gmra.mxu1 %v2442_v16 }
 0x49e   : >> { %7002 = vmatpush3.msra.mxu1 %v7868_v44  ;;  %7009 = vmatprep.mubr.msk.f32.mxu1 %vm7569_vm4, %v7568_v48 }
 0x49f   : >> { %7003 = vmatprep.subr.mxu1 %v7568_v48  ;;  %v2444_v60 = vand.u32 4294901760, %v2443_v18 }
 0x4a0   : >> { %7004 = vmatpush3.msra.mxu1 %v7871_v45 }
 0x4a1   : >> { %7005 = vmatprep.subr.mxu1 %v7568_v48  ;;  %v2445_v14 = vsub.f32 %v2443_v18, %v2444_v60 }
 0x4a2   : >> { %7006 = vmatpush3.msra.mxu1 %v7874_v46 }
 0x4a3   : >> { %7007 = vmatprep.subr.mxu1 %v7568_v48  ;;  %v2446_v62 = vand.u32 4294901760, %v2445_v14 }
 0x4a4   : >> { %7008 = vmatpush3.msra.mxu1 %v7879_v49 }
 0x4a5   : >> { %7010 = vmatmul.mubr.f32.vlgmr.msra.gmra.mxu1 %v2444_v60  ;;  %7023 = vmatprep.subr.mxu1 %v7568_v48 }
 0x4a6   : >> { %6977 = vmatmul.mubr.f32.vlgmr.msra.gmra.mxu0 %v2446_v62  ;;  %7024 = vmatpush3.msra.mxu1 %v7868_v44 }
 0x4a7   : >> { %6991 = vmatpush3.msra.mxu0 %v7884_v51  ;;  %7025 = vmatprep.subr.mxu1 %v7568_v48 }
 0x4a8   : >> { %6992 = vmatprep.subr.mxu0 %v7568_v48  ;;  %7026 = vmatpush3.msra.mxu1 %v7871_v45 }
 0x4a9   : >> { %6993 = vmatpush3.msra.mxu0 %v7888_v52  ;;  %7027 = vmatprep.subr.mxu1 %v7568_v48 }
 0x4aa   : >> { %6994 = vmatprep.subr.mxu0 %v7568_v48  ;;  %7028 = vmatpush3.msra.mxu1 %v7874_v46 }
 0x4ab   : >> { %6995 = vmatpush3.msra.mxu0 %v7892_v53  ;;  %7029 = vmatprep.subr.mxu1 %v7568_v48 }
 0x4ac   : >> { %6996 = vmatprep.subr.mxu0 %v7568_v48  ;;  %6998 = vmatprep.mubr.msk.f32.mxu0 %vm7569_vm4, %v7568_v48 }
 0x4ad   : >> { %6997 = vmatpush3.msra.mxu0 %v7902_v54  ;;  %7030 = vmatpush3.msra.mxu1 %v7879_v49 }
 0x4ae   : >> { %7031 = vmatprep.mubr.msk.f32.mxu1 %vm7569_vm4, %v7568_v48  ;;  %6999 = vmatmul.mubr.f32.vlgmr.msra.gmra.mxu0 %v2443_v18 }
 0x4af   : >> { %7012 = vmatprep.subr.mxu0 %v7568_v48  ;;  %7032 = vmatmul.mubr.f32.vlgmr.msra.gmra.mxu1 %v2442_v16 }
 0x4b0   : >> { %7013 = vmatpush3.msra.mxu0 %v7915_v55  ;;  %7020 = vmatprep.mubr.msk.f32.mxu0 %vm7569_vm4, %v7568_v48 }
 0x4b1   : >> { %7014 = vmatprep.subr.mxu0 %v7568_v48  ;;  %7041 = vmatprep.subr.mxu1 %v7568_v48 }
 0x4b2   : >> { %7015 = vmatpush3.msra.mxu0 %v7919_v56  ;;  %7042 = vmatpush3.msra.mxu1 %v8035_v11 }
 0x4b3   : >> { %7016 = vmatprep.subr.mxu0 %v7568_v48  ;;  %7043 = vmatprep.subr.mxu1 %v7568_v48 }
 0x4b4   : >> { %7017 = vmatpush3.msra.mxu0 %v7922_v57  ;;  %7044 = vmatpush3.msra.mxu1 %v8040_v39 }
 0x4b5   : >> { %7018 = vmatprep.subr.mxu0 %v7568_v48  ;;  %7045 = vmatprep.mubr.msk.f32.mxu1 %vm7569_vm4, %v7568_v48 }
 0x4b6   : >> { %7019 = vmatpush3.msra.mxu0 %v7928_v59  ;;  %7055 = vmatprep.subr.mxu1 %v7568_v48 }
 0x4b7   : >> { %7021 = vmatmul.mubr.f32.vlgmr.msra.gmra.mxu0 %v2442_v16  ;;  %7034 = vmatprep.subr.mxu0 %v7568_v48 }
 0x4b8   : >> { %7035 = vmatpush3.msra.mxu0 %v8010_v25  ;;  %7038 = vmatprep.mubr.msk.f32.mxu0 %vm7569_vm4, %v7568_v48 }
 0x4b9   : >> { %7036 = vmatprep.subr.mxu0 %v7568_v48 }
 0x4ba   : >> { %7037 = vmatpush3.msra.mxu0 %v8017_v28 }
 0x4bb   : >> { %7048 = vmatprep.subr.mxu0 %v7568_v48 }
 0x55d   : >> { %v2539_v19 = vpop.f32.mrf.mxu1 }
 0x55f   : >> { %v6989_v10 = vpop.f32.mrf.mxu1 }
 0x565   : >> { %v2696_v20 = vpop.f32.mrf.mxu1 }
 0x566   : >> { %v2448_v21 = vpop.f32.mrf.mxu0 }
 0x567   : >> { %v7011_v22 = vpop.f32.mrf.mxu1  ;;  %v2540_v31 = vadd.f32 %v2539_v19, %v2448_v21 }
 0x568   : >> { %v6978_v23 = vpop.f32.mrf.mxu0 }
 0x56e   : >> { %v2619_v24 = vpop.f32.mrf.mxu0 }
 0x56f   : >> { %v2854_v26 = vpop.f32.mrf.mxu1  ;;  %v2620_v35 = vadd.f32 %v2619_v24, %v2540_v31 }
 0x570   : >> { %v7000_v32 = vpop.f32.mrf.mxu0 }
 0x571   : >> { %v7033_v34 = vpop.f32.mrf.mxu1  ;;  %v2697_v36 = vadd.f32 %v2696_v20, %v2620_v35 }
 0x577   : >> { %v2779_v37 = vpop.f32.mrf.mxu0 }
 0x578   : >> { %v2780_v38 = vadd.f32 %v2779_v37, %v2697_v36 }
 0x579   : >> { %v7022_v40 = vpop.f32.mrf.mxu0 }
 0x57a   : >> { %v8160_v41 = vadd.f32 %v2854_v26, %v2780_v38 }
 0x57c   : >> { %v2858_v42 = vsub.f32 %v8160_v41, %v8045_v50  ;;  %v2859_v36 = vadd.f32 %v8160_v41, %v8104_v8 }
 0x57e   : >> { %2861 = vrot.lane.b32.xlu1 %v2858_v42, %s7571_s30 }
 0x5f0   : >> { %v2862_v43 = vpop.permute.xlu1 %2861 }
 0x5f1   : >> { %v2863_v47 = vsel %vm1903_vm6, %v2862_v43, 0 }
 0x5f2   : >> { %v2932_v58 = vand.u32 4294901760, %v2863_v47 }
 0x5f4   : >> { %v2933_v61 = vsub.f32 %v2863_v47, %v2932_v58  ;;  %7046 = vmatmul.mubr.f32.vlgmr.msra.gmra.mxu1 %v2932_v58 }
 0x5f5   : >> { %7056 = vmatpush3.msra.mxu1 %v8010_v25  ;;  %7059 = vmatprep.mubr.msk.f32.mxu1 %vm7569_vm4, %v7568_v48 }
 0x5f6   : >> { %v2934_v7 = vand.u32 4294901760, %v2933_v61  ;;  %7057 = vmatprep.subr.mxu1 %v7568_v48 }
 0x5f7   : >> { %7058 = vmatpush3.msra.mxu1 %v8017_v28 }
 0x5f8   : >> { %v2935_v13 = vsub.f32 %v2933_v61, %v2934_v7  ;;  %7060 = vmatmul.mubr.f32.vlgmr.msra.gmra.mxu1 %v2934_v7  ;;  %7069 = vmatprep.subr.mxu1 %v7568_v48 }
 0x5f9   : >> { %7070 = vmatpush3.msra.mxu1 %v8010_v25  ;;  %7073 = vmatprep.mubr.msk.f32.mxu1 %vm7569_vm4, %v7568_v48 }
 0x5fa   : >> { %v2936_v16 = vand.u32 4294901760, %v2935_v13  ;;  %7071 = vmatprep.subr.mxu1 %v7568_v48 }
 0x5fb   : >> { %7072 = vmatpush3.msra.mxu1 %v8017_v28 }
 0x5fc   : >> { %7039 = vmatmul.mubr.f32.vlgmr.msra.gmra.mxu0 %v2936_v16  ;;  %7074 = vmatmul.mubr.f32.vlgmr.msra.gmra.mxu1 %v2932_v58 }
 0x5fd   : >> { %7049 = vmatpush3.msra.mxu0 %v8014_v27  ;;  %7052 = vmatprep.mubr.msk.f32.mxu0 %vm7569_vm4, %v7568_v48 }
 0x5fe   : >> { %7050 = vmatprep.subr.mxu0 %v7568_v48  ;;  %7087 = vmatprep.subr.mxu1 %v7568_v48 }
 0x5ff   : >> { %7051 = vmatpush3.msra.mxu0 %v8026_v30  ;;  %7088 = vmatpush3.msra.mxu1 %v7941_v9 }
 0x600   : >> { %7062 = vmatprep.subr.mxu0 %v7568_v48  ;;  %7053 = vmatmul.mubr.f32.vlgmr.msra.gmra.mxu0 %v2933_v61 }
 0x601   : >> { %7063 = vmatpush3.msra.mxu0 %v8022_v29  ;;  %7066 = vmatprep.mubr.msk.f32.mxu0 %vm7569_vm4, %v7568_v48 }
 0x602   : >> { %7064 = vmatprep.subr.mxu0 %v7568_v48  ;;  %7089 = vmatprep.subr.mxu1 %v7568_v48 }
 0x603   : >> { %7065 = vmatpush3.msra.mxu0 %v8033_v33  ;;  %7090 = vmatpush3.msra.mxu1 %v7943_v12 }
 0x604   : >> { %7067 = vmatmul.mubr.f32.vlgmr.msra.gmra.mxu0 %v2932_v58  ;;  %7091 = vmatprep.subr.mxu1 %v7568_v48 }
 0x605   : >> { %7092 = vmatpush3.msra.mxu1 %v7952_v15  ;;  %7076 = vmatprep.subr.mxu0 %v7568_v48 }
 0x606   : >> { %7093 = vmatprep.subr.mxu1 %v7568_v48  ;;  %7095 = vmatprep.mubr.msk.f32.mxu1 %vm7569_vm4, %v7568_v48 }
 0x607   : >> { %7094 = vmatpush3.msra.mxu1 %v7958_v17  ;;  %7077 = vmatpush3.msra.mxu0 %v7868_v44 }
 0x608   : >> { %7109 = vmatprep.subr.mxu1 %v7568_v48  ;;  %7078 = vmatprep.subr.mxu0 %v7568_v48 }
 0x609   : >> { %7079 = vmatpush3.msra.mxu0 %v7871_v45  ;;  %7084 = vmatprep.mubr.msk.f32.mxu0 %vm7569_vm4, %v7568_v48 }
 0x60a   : >> { %7080 = vmatprep.subr.mxu0 %v7568_v48 }
 0x60b   : >> { %7081 = vmatpush3.msra.mxu0 %v7874_v46 }
 0x60c   : >> { %7082 = vmatprep.subr.mxu0 %v7568_v48 }
 0x60d   : >> { %7083 = vmatpush3.msra.mxu0 %v7879_v49 }
 0x60e   : >> { %7098 = vmatprep.subr.mxu0 %v7568_v48 }
 0x6b4   : >> { %v3019_v18 = vpop.f32.mrf.mxu1 }
 0x6b6   : >> { %v7047_v60 = vpop.f32.mrf.mxu1 }
 0x6b8   : >> { %v3170_v14 = vpop.f32.mrf.mxu1 }
 0x6ba   : >> { %v7061_v62 = vpop.f32.mrf.mxu1 }
 0x6bc   : >> { %v2938_v19 = vpop.f32.mrf.mxu0  ;;  %v3320_v10 = vpop.f32.mrf.mxu1 }
 0x6bd   : >> { %v3020_v22 = vadd.f32 %v3019_v18, %v2938_v19 }
 0x6be   : >> { %v7040_v20 = vpop.f32.mrf.mxu0  ;;  %v7075_v21 = vpop.f32.mrf.mxu1 }
 0x6c0   : >> { %v3095_v23 = vpop.f32.mrf.mxu0 }
 0x6c1   : >> { %v3096_v24 = vadd.f32 %v3095_v23, %v3020_v22 }
 0x6c2   : >> { %v7054_v26 = vpop.f32.mrf.mxu0 }
 0x6c3   : >> { %v3171_v31 = vadd.f32 %v3170_v14, %v3096_v24 }
 0x6c4   : >> { %v3247_v32 = vpop.f32.mrf.mxu0 }
 0x6c5   : >> { %v3248_v34 = vadd.f32 %v3247_v32, %v3171_v31 }
 0x6c6   : >> { %v7068_v35 = vpop.f32.mrf.mxu0 }
 0x6c7   : >> { %v3321_v37 = vadd.f32 %v3320_v10, %v3248_v34 }
 0x6c9   : >> { %v3324_v38 = vadd.f32 %v3321_v37, %v2859_v36 }
 0x6cb   : >> { %v3325_v40 = vmul.f32 0.05, %v3324_v38 }
 0x6cd   : >> { %v8213_v42 = vsub.f32 %v8100_v63, %v3325_v40 }
 0x6cf   : >> { %v3327_v43 = vmul.f32 0.05, %v8213_v42 }
 0x6d1   : >> { %v8217_v47 = vadd.f32 %v3327_v43, %v8104_v8 }
 0x6d3   : >> { %v3330_v58 = vsel %vm1405_vm5, %v8217_v47, 0 }
 0x6d4   : >> { %v3401_v61 = vand.u32 4294901760, %v3330_v58 }
 0x6d6   : >> { %v3402_v7 = vsub.f32 %v3330_v58, %v3401_v61  ;;  %7096 = vmatmul.mubr.f32.vlgmr.msra.gmra.mxu1 %v3401_v61 }
 0x6d7   : >> { %7110 = vmatpush3.msra.mxu1 %v7868_v44  ;;  %7117 = vmatprep.mubr.msk.f32.mxu1 %vm7569_vm4, %v7568_v48 }
 0x6d8   : >> { %7111 = vmatprep.subr.mxu1 %v7568_v48  ;;  %v3403_v63 = vand.u32 4294901760, %v3402_v7 }
 0x6d9   : >> { %7112 = vmatpush3.msra.mxu1 %v7871_v45 }
 0x6da   : >> { %7113 = vmatprep.subr.mxu1 %v7568_v48  ;;  %v3404_v8 = vsub.f32 %v3402_v7, %v3403_v63 }
 0x6db   : >> { %7114 = vmatpush3.msra.mxu1 %v7874_v46 }
 0x6dc   : >> { %7115 = vmatprep.subr.mxu1 %v7568_v48  ;;  %v3405_v41 = vand.u32 4294901760, %v3404_v8 }
 0x6dd   : >> { %7116 = vmatpush3.msra.mxu1 %v7879_v49 }
 0x6de   : >> { %7118 = vmatmul.mubr.f32.vlgmr.msra.gmra.mxu1 %v3403_v63  ;;  %7131 = vmatprep.subr.mxu1 %v7568_v48 }
 0x6df   : >> { %7085 = vmatmul.mubr.f32.vlgmr.msra.gmra.mxu0 %v3405_v41  ;;  %7132 = vmatpush3.msra.mxu1 %v7868_v44 }
 0x6e0   : >> { %7099 = vmatpush3.msra.mxu0 %v7884_v51  ;;  %7133 = vmatprep.subr.mxu1 %v7568_v48 }
 0x6e1   : >> { %7100 = vmatprep.subr.mxu0 %v7568_v48  ;;  %7134 = vmatpush3.msra.mxu1 %v7871_v45 }
 0x6e2   : >> { %7101 = vmatpush3.msra.mxu0 %v7888_v52  ;;  %7135 = vmatprep.subr.mxu1 %v7568_v48 }
 0x6e3   : >> { %7102 = vmatprep.subr.mxu0 %v7568_v48  ;;  %7136 = vmatpush3.msra.mxu1 %v7874_v46 }
 0x6e4   : >> { %7103 = vmatpush3.msra.mxu0 %v7892_v53  ;;  %7137 = vmatprep.subr.mxu1 %v7568_v48 }
 0x6e5   : >> { %7104 = vmatprep.subr.mxu0 %v7568_v48  ;;  %7106 = vmatprep.mubr.msk.f32.mxu0 %vm7569_vm4, %v7568_v48 }
 0x6e6   : >> { %7105 = vmatpush3.msra.mxu0 %v7902_v54  ;;  %7138 = vmatpush3.msra.mxu1 %v7879_v49 }
 0x6e7   : >> { %7139 = vmatprep.mubr.msk.f32.mxu1 %vm7569_vm4, %v7568_v48  ;;  %7107 = vmatmul.mubr.f32.vlgmr.msra.gmra.mxu0 %v3402_v7 }
 0x6e8   : >> { %7120 = vmatprep.subr.mxu0 %v7568_v48  ;;  %7140 = vmatmul.mubr.f32.vlgmr.msra.gmra.mxu1 %v3401_v61 }
 0x6e9   : >> { %7121 = vmatpush3.msra.mxu0 %v7915_v55  ;;  %7128 = vmatprep.mubr.msk.f32.mxu0 %vm7569_vm4, %v7568_v48 }
 0x6ea   : >> { %7122 = vmatprep.subr.mxu0 %v7568_v48  ;;  %7149 = vmatprep.subr.mxu1 %v7568_v48 }
 0x6eb   : >> { %7123 = vmatpush3.msra.mxu0 %v7919_v56  ;;  %7150 = vmatpush3.msra.mxu1 %v8035_v11 }
 0x6ec   : >> { %7124 = vmatprep.subr.mxu0 %v7568_v48  ;;  %7151 = vmatprep.subr.mxu1 %v7568_v48 }
 0x6ed   : >> { %7125 = vmatpush3.msra.mxu0 %v7922_v57  ;;  %7152 = vmatpush3.msra.mxu1 %v8040_v39 }
 0x6ee   : >> { %7126 = vmatprep.subr.mxu0 %v7568_v48  ;;  %7153 = vmatprep.mubr.msk.f32.mxu1 %vm7569_vm4, %v7568_v48 }
 0x6ef   : >> { %7127 = vmatpush3.msra.mxu0 %v7928_v59  ;;  %7163 = vmatprep.subr.mxu1 %v7568_v48 }
 0x6f0   : >> { %7129 = vmatmul.mubr.f32.vlgmr.msra.gmra.mxu0 %v3401_v61  ;;  %7142 = vmatprep.subr.mxu0 %v7568_v48 }
 0x6f1   : >> { %7143 = vmatpush3.msra.mxu0 %v8010_v25  ;;  %7146 = vmatprep.mubr.msk.f32.mxu0 %vm7569_vm4, %v7568_v48 }
 0x6f2   : >> { %7144 = vmatprep.subr.mxu0 %v7568_v48 }
 0x6f3   : >> { %7145 = vmatpush3.msra.mxu0 %v8017_v28 }
 0x6f4   : >> { %7156 = vmatprep.subr.mxu0 %v7568_v48 }
 0x796   : >> { %v3498_v13 = vpop.f32.mrf.mxu1 }
 0x798   : >> { %v7097_v16 = vpop.f32.mrf.mxu1 }
 0x79e   : >> { %v3655_v18 = vpop.f32.mrf.mxu1 }
 0x79f   : >> { %v3407_v60 = vpop.f32.mrf.mxu0 }
 0x7a0   : >> { %v7119_v14 = vpop.f32.mrf.mxu1  ;;  %v3499_v20 = vadd.f32 %v3498_v13, %v3407_v60 }
 0x7a1   : >> { %v7086_v62 = vpop.f32.mrf.mxu0 }
 0x7a7   : >> { %v3578_v19 = vpop.f32.mrf.mxu0 }
 0x7a8   : >> { %v3813_v10 = vpop.f32.mrf.mxu1  ;;  %v3579_v23 = vadd.f32 %v3578_v19, %v3499_v20 }
 0x7a9   : >> { %v7108_v21 = vpop.f32.mrf.mxu0 }
 0x7aa   : >> { %v7141_v22 = vpop.f32.mrf.mxu1  ;;  %v3656_v24 = vadd.f32 %v3655_v18, %v3579_v23 }
 0x7b0   : >> { %v3738_v26 = vpop.f32.mrf.mxu0 }
 0x7b1   : >> { %v3739_v31 = vadd.f32 %v3738_v26, %v3656_v24 }
 0x7b2   : >> { %v7130_v32 = vpop.f32.mrf.mxu0 }
 0x7b3   : >> { %v8273_v34 = vadd.f32 %v3813_v10, %v3739_v31 }
 0x7b5   : >> { %v3817_v35 = vsub.f32 %v8273_v34, %v8045_v50  ;;  %v3818_v24 = vadd.f32 %v8273_v34, %v8217_v47 }
 0x7b7   : >> { %3820 = vrot.lane.b32.xlu1 %v3817_v35, %s7571_s30 }
 0x829   : >> { %v3821_v36 = vpop.permute.xlu1 %3820 }
 0x82a   : >> { %v3822_v37 = vsel %vm1903_vm6, %v3821_v36, 0 }
 0x82b   : >> { %v3891_v38 = vand.u32 4294901760, %v3822_v37 }
 0x82d   : >> { %v3892_v40 = vsub.f32 %v3822_v37, %v3891_v38  ;;  %7154 = vmatmul.mubr.f32.vlgmr.msra.gmra.mxu1 %v3891_v38 }
 0x82e   : >> { %7164 = vmatpush3.msra.mxu1 %v8010_v25  ;;  %7167 = vmatprep.mubr.msk.f32.mxu1 %vm7569_vm4, %v7568_v48 }
 0x82f   : >> { %v3893_v43 = vand.u32 4294901760, %v3892_v40  ;;  %7165 = vmatprep.subr.mxu1 %v7568_v48 }
 0x830   : >> { %7166 = vmatpush3.msra.mxu1 %v8017_v28 }
 0x831   : >> { %v3894_v58 = vsub.f32 %v3892_v40, %v3893_v43  ;;  %7168 = vmatmul.mubr.f32.vlgmr.msra.gmra.mxu1 %v3893_v43  ;;  %7177 = vmatprep.subr.mxu1 %v7568_v48 }
 0x832   : >> { %7178 = vmatpush3.msra.mxu1 %v8010_v25  ;;  %7181 = vmatprep.mubr.msk.f32.mxu1 %vm7569_vm4, %v7568_v48 }
 0x833   : >> { %v3895_v61 = vand.u32 4294901760, %v3894_v58  ;;  %7179 = vmatprep.subr.mxu1 %v7568_v48 }
 0x834   : >> { %7180 = vmatpush3.msra.mxu1 %v8017_v28 }
 0x835   : >> { %7147 = vmatmul.mubr.f32.vlgmr.msra.gmra.mxu0 %v3895_v61  ;;  %7182 = vmatmul.mubr.f32.vlgmr.msra.gmra.mxu1 %v3891_v38 }
 0x836   : >> { %7157 = vmatpush3.msra.mxu0 %v8014_v27  ;;  %7160 = vmatprep.mubr.msk.f32.mxu0 %vm7569_vm4, %v7568_v48 }
 0x837   : >> { %7158 = vmatprep.subr.mxu0 %v7568_v48  ;;  %7195 = vmatprep.subr.mxu1 %v7568_v48 }
 0x838   : >> { %7159 = vmatpush3.msra.mxu0 %v8026_v30  ;;  %7196 = vmatpush3.msra.mxu1 %v7941_v9 }
 0x839   : >> { %7170 = vmatprep.subr.mxu0 %v7568_v48  ;;  %7161 = vmatmul.mubr.f32.vlgmr.msra.gmra.mxu0 %v3892_v40 }
 0x83a   : >> { %7171 = vmatpush3.msra.mxu0 %v8022_v29  ;;  %7174 = vmatprep.mubr.msk.f32.mxu0 %vm7569_vm4, %v7568_v48 }
 0x83b   : >> { %7172 = vmatprep.subr.mxu0 %v7568_v48  ;;  %7197 = vmatprep.subr.mxu1 %v7568_v48 }
 0x83c   : >> { %7173 = vmatpush3.msra.mxu0 %v8033_v33  ;;  %7198 = vmatpush3.msra.mxu1 %v7943_v12 }
 0x83d   : >> { %7175 = vmatmul.mubr.f32.vlgmr.msra.gmra.mxu0 %v3891_v38  ;;  %7199 = vmatprep.subr.mxu1 %v7568_v48 }
 0x83e   : >> { %7200 = vmatpush3.msra.mxu1 %v7952_v15  ;;  %7184 = vmatprep.subr.mxu0 %v7568_v48 }
 0x83f   : >> { %7201 = vmatprep.subr.mxu1 %v7568_v48  ;;  %7203 = vmatprep.mubr.msk.f32.mxu1 %vm7569_vm4, %v7568_v48 }
 0x840   : >> { %7202 = vmatpush3.msra.mxu1 %v7958_v17  ;;  %7185 = vmatpush3.msra.mxu0 %v7868_v44 }
 0x841   : >> { %7217 = vmatprep.subr.mxu1 %v7568_v48  ;;  %7186 = vmatprep.subr.mxu0 %v7568_v48 }
 0x842   : >> { %7187 = vmatpush3.msra.mxu0 %v7871_v45  ;;  %7192 = vmatprep.mubr.msk.f32.mxu0 %vm7569_vm4, %v7568_v48 }
 0x843   : >> { %7188 = vmatprep.subr.mxu0 %v7568_v48 }
 0x844   : >> { %7189 = vmatpush3.msra.mxu0 %v7874_v46 }
 0x845   : >> { %7190 = vmatprep.subr.mxu0 %v7568_v48 }
 0x846   : >> { %7191 = vmatpush3.msra.mxu0 %v7879_v49 }
 0x847   : >> { %7206 = vmatprep.subr.mxu0 %v7568_v48 }
 0x8ed   : >> { %v3978_v7 = vpop.f32.mrf.mxu1 }
 0x8ef   : >> { %v7155_v63 = vpop.f32.mrf.mxu1 }
 0x8f1   : >> { %v4129_v8 = vpop.f32.mrf.mxu1 }
 0x8f3   : >> { %v7169_v41 = vpop.f32.mrf.mxu1 }
 0x8f5   : >> { %v3897_v13 = vpop.f32.mrf.mxu0  ;;  %v4279_v16 = vpop.f32.mrf.mxu1 }
 0x8f6   : >> { %v3979_v14 = vadd.f32 %v3978_v7, %v3897_v13 }
 0x8f7   : >> { %v7148_v18 = vpop.f32.mrf.mxu0  ;;  %v7183_v60 = vpop.f32.mrf.mxu1 }
 0x8f9   : >> { %v4054_v62 = vpop.f32.mrf.mxu0 }
 0x8fa   : >> { %v4055_v19 = vadd.f32 %v4054_v62, %v3979_v14 }
 0x8fb   : >> { %v7162_v10 = vpop.f32.mrf.mxu0 }
 0x8fc   : >> { %v4130_v20 = vadd.f32 %v4129_v8, %v4055_v19 }
 0x8fd   : >> { %v4206_v21 = vpop.f32.mrf.mxu0 }
 0x8fe   : >> { %v4207_v22 = vadd.f32 %v4206_v21, %v4130_v20 }
 0x8ff   : >> { %v7176_v23 = vpop.f32.mrf.mxu0 }
 0x900   : >> { %v4280_v26 = vadd.f32 %v4279_v16, %v4207_v22 }
 0x902   : >> { %v4283_v31 = vadd.f32 %v4280_v26, %v3818_v24 }
 0x904   : >> { %v4284_v32 = vmul.f32 0.05, %v4283_v31 }
 0x906   : >> { %v8326_v35 = vsub.f32 %v8213_v42, %v4284_v32 }
 0x908   : >> { %v4286_v36 = vmul.f32 0.05, %v8326_v35 }
 0x90a   : >> { %v8330_v37 = vadd.f32 %v4286_v36, %v8217_v47 }
 0x90c   : >> { %v4289_v38 = vsel %vm1405_vm5, %v8330_v37, 0 }
 0x90d   : >> { %v4360_v40 = vand.u32 4294901760, %v4289_v38 }
 0x90f   : >> { %v4361_v43 = vsub.f32 %v4289_v38, %v4360_v40  ;;  %7204 = vmatmul.mubr.f32.vlgmr.msra.gmra.mxu1 %v4360_v40 }
 0x910   : >> { %7218 = vmatpush3.msra.mxu1 %v7868_v44  ;;  %7225 = vmatprep.mubr.msk.f32.mxu1 %vm7569_vm4, %v7568_v48 }
 0x911   : >> { %7219 = vmatprep.subr.mxu1 %v7568_v48  ;;  %v4362_v42 = vand.u32 4294901760, %v4361_v43 }
 0x912   : >> { %7220 = vmatpush3.msra.mxu1 %v7871_v45 }
 0x913   : >> { %7221 = vmatprep.subr.mxu1 %v7568_v48  ;;  %v4363_v47 = vsub.f32 %v4361_v43, %v4362_v42 }
 0x914   : >> { %7222 = vmatpush3.msra.mxu1 %v7874_v46 }
 0x915   : >> { %7223 = vmatprep.subr.mxu1 %v7568_v48  ;;  %v4364_v34 = vand.u32 4294901760, %v4363_v47 }
 0x916   : >> { %7224 = vmatpush3.msra.mxu1 %v7879_v49 }
 0x917   : >> { %7226 = vmatmul.mubr.f32.vlgmr.msra.gmra.mxu1 %v4362_v42  ;;  %7239 = vmatprep.subr.mxu1 %v7568_v48 }
 0x918   : >> { %7193 = vmatmul.mubr.f32.vlgmr.msra.gmra.mxu0 %v4364_v34  ;;  %7240 = vmatpush3.msra.mxu1 %v7868_v44 }
 0x919   : >> { %7207 = vmatpush3.msra.mxu0 %v7884_v51  ;;  %7241 = vmatprep.subr.mxu1 %v7568_v48 }
 0x91a   : >> { %7208 = vmatprep.subr.mxu0 %v7568_v48  ;;  %7242 = vmatpush3.msra.mxu1 %v7871_v45 }
 0x91b   : >> { %7209 = vmatpush3.msra.mxu0 %v7888_v52  ;;  %7243 = vmatprep.subr.mxu1 %v7568_v48 }
 0x91c   : >> { %7210 = vmatprep.subr.mxu0 %v7568_v48  ;;  %7244 = vmatpush3.msra.mxu1 %v7874_v46 }
 0x91d   : >> { %7211 = vmatpush3.msra.mxu0 %v7892_v53  ;;  %7245 = vmatprep.subr.mxu1 %v7568_v48 }
 0x91e   : >> { %7212 = vmatprep.subr.mxu0 %v7568_v48  ;;  %7214 = vmatprep.mubr.msk.f32.mxu0 %vm7569_vm4, %v7568_v48 }
 0x91f   : >> { %7213 = vmatpush3.msra.mxu0 %v7902_v54  ;;  %7246 = vmatpush3.msra.mxu1 %v7879_v49 }
 0x920   : >> { %7247 = vmatprep.mubr.msk.f32.mxu1 %vm7569_vm4, %v7568_v48  ;;  %7215 = vmatmul.mubr.f32.vlgmr.msra.gmra.mxu0 %v4361_v43 }
 0x921   : >> { %7228 = vmatprep.subr.mxu0 %v7568_v48  ;;  %7248 = vmatmul.mubr.f32.vlgmr.msra.gmra.mxu1 %v4360_v40 }
 0x922   : >> { %7229 = vmatpush3.msra.mxu0 %v7915_v55  ;;  %7236 = vmatprep.mubr.msk.f32.mxu0 %vm7569_vm4, %v7568_v48 }
 0x923   : >> { %7230 = vmatprep.subr.mxu0 %v7568_v48  ;;  %7257 = vmatprep.subr.mxu1 %v7568_v48 }
 0x924   : >> { %7231 = vmatpush3.msra.mxu0 %v7919_v56  ;;  %7258 = vmatpush3.msra.mxu1 %v8035_v11 }
 0x925   : >> { %7232 = vmatprep.subr.mxu0 %v7568_v48  ;;  %7259 = vmatprep.subr.mxu1 %v7568_v48 }
 0x926   : >> { %7233 = vmatpush3.msra.mxu0 %v7922_v57  ;;  %7260 = vmatpush3.msra.mxu1 %v8040_v39 }
 0x927   : >> { %7234 = vmatprep.subr.mxu0 %v7568_v48  ;;  %7261 = vmatprep.mubr.msk.f32.mxu1 %vm7569_vm4, %v7568_v48 }
 0x928   : >> { %7235 = vmatpush3.msra.mxu0 %v7928_v59  ;;  %7271 = vmatprep.subr.mxu1 %v7568_v48 }
 0x929   : >> { %7237 = vmatmul.mubr.f32.vlgmr.msra.gmra.mxu0 %v4360_v40  ;;  %7250 = vmatprep.subr.mxu0 %v7568_v48 }
 0x92a   : >> { %7251 = vmatpush3.msra.mxu0 %v8010_v25  ;;  %7254 = vmatprep.mubr.msk.f32.mxu0 %vm7569_vm4, %v7568_v48 }
 0x92b   : >> { %7252 = vmatprep.subr.mxu0 %v7568_v48 }
 0x92c   : >> { %7253 = vmatpush3.msra.mxu0 %v8017_v28 }
 0x92d   : >> { %7264 = vmatprep.subr.mxu0 %v7568_v48 }
 0x9cf   : >> { %v4457_v58 = vpop.f32.mrf.mxu1 }
 0x9d1   : >> { %v7205_v61 = vpop.f32.mrf.mxu1 }
 0x9d7   : >> { %v4614_v7 = vpop.f32.mrf.mxu1 }
 0x9d8   : >> { %v4366_v63 = vpop.f32.mrf.mxu0 }
 0x9d9   : >> { %v7227_v8 = vpop.f32.mrf.mxu1  ;;  %v4458_v18 = vadd.f32 %v4457_v58, %v4366_v63 }
 0x9da   : >> { %v7194_v41 = vpop.f32.mrf.mxu0 }
 0x9e0   : >> { %v4537_v13 = vpop.f32.mrf.mxu0 }
 0x9e1   : >> { %v4772_v16 = vpop.f32.mrf.mxu1  ;;  %v4538_v62 = vadd.f32 %v4537_v13, %v4458_v18 }
 0x9e2   : >> { %v7216_v60 = vpop.f32.mrf.mxu0 }
 0x9e3   : >> { %v7249_v14 = vpop.f32.mrf.mxu1  ;;  %v4615_v19 = vadd.f32 %v4614_v7, %v4538_v62 }
 0x9e9   : >> { %v4697_v10 = vpop.f32.mrf.mxu0 }
 0x9ea   : >> { %v4698_v20 = vadd.f32 %v4697_v10, %v4615_v19 }
 0x9eb   : >> { %v7238_v21 = vpop.f32.mrf.mxu0 }
 0x9ec   : >> { %v8386_v22 = vadd.f32 %v4772_v16, %v4698_v20 }
 0x9ee   : >> { %v4776_v23 = vsub.f32 %v8386_v22, %v8045_v50  ;;  %v4777_v18 = vadd.f32 %v8386_v22, %v8330_v37 }
 0x9f0   : >> { %4779 = vrot.lane.b32.xlu0 %v4776_v23, %s7571_s30 }
 0xa62   : >> { %v4780_v24 = vpop.permute.xlu0 %4779 }
 0xa63   : >> { %v4781_v26 = vsel %vm1903_vm6, %v4780_v24, 0 }
 0xa64   : >> { %v4850_v31 = vand.u32 4294901760, %v4781_v26 }
 0xa66   : >> { %v4851_v32 = vsub.f32 %v4781_v26, %v4850_v31  ;;  %7262 = vmatmul.mubr.f32.vlgmr.msra.gmra.mxu1 %v4850_v31 }
 0xa67   : >> { %7272 = vmatpush3.msra.mxu1 %v8010_v25  ;;  %7275 = vmatprep.mubr.msk.f32.mxu1 %vm7569_vm4, %v7568_v48 }
 0xa68   : >> { %v4852_v36 = vand.u32 4294901760, %v4851_v32  ;;  %7273 = vmatprep.subr.mxu1 %v7568_v48 }
 0xa69   : >> { %7274 = vmatpush3.msra.mxu1 %v8017_v28 }
 0xa6a   : >> { %v4853_v38 = vsub.f32 %v4851_v32, %v4852_v36  ;;  %7276 = vmatmul.mubr.f32.vlgmr.msra.gmra.mxu1 %v4852_v36  ;;  %7285 = vmatprep.subr.mxu1 %v7568_v48 }
 0xa6b   : >> { %7286 = vmatpush3.msra.mxu1 %v8010_v25  ;;  %7289 = vmatprep.mubr.msk.f32.mxu1 %vm7569_vm4, %v7568_v48 }
 0xa6c   : >> { %v4854_v40 = vand.u32 4294901760, %v4853_v38  ;;  %7287 = vmatprep.subr.mxu1 %v7568_v48 }
 0xa6d   : >> { %7288 = vmatpush3.msra.mxu1 %v8017_v28 }
 0xa6e   : >> { %7255 = vmatmul.mubr.f32.vlgmr.msra.gmra.mxu0 %v4854_v40  ;;  %7290 = vmatmul.mubr.f32.vlgmr.msra.gmra.mxu1 %v4850_v31 }
 0xa6f   : >> { %7265 = vmatpush3.msra.mxu0 %v8014_v27  ;;  %7268 = vmatprep.mubr.msk.f32.mxu0 %vm7569_vm4, %v7568_v48 }
 0xa70   : >> { %7266 = vmatprep.subr.mxu0 %v7568_v48  ;;  %7303 = vmatprep.subr.mxu1 %v7568_v48 }
 0xa71   : >> { %7267 = vmatpush3.msra.mxu0 %v8026_v30  ;;  %7304 = vmatpush3.msra.mxu1 %v7941_v9 }
 0xa72   : >> { %7278 = vmatprep.subr.mxu0 %v7568_v48  ;;  %7269 = vmatmul.mubr.f32.vlgmr.msra.gmra.mxu0 %v4851_v32 }
 0xa73   : >> { %7279 = vmatpush3.msra.mxu0 %v8022_v29  ;;  %7282 = vmatprep.mubr.msk.f32.mxu0 %vm7569_vm4, %v7568_v48 }
 0xa74   : >> { %7280 = vmatprep.subr.mxu0 %v7568_v48  ;;  %7305 = vmatprep.subr.mxu1 %v7568_v48 }
 0xa75   : >> { %7281 = vmatpush3.msra.mxu0 %v8033_v33  ;;  %7306 = vmatpush3.msra.mxu1 %v7943_v12 }
 0xa76   : >> { %7283 = vmatmul.mubr.f32.vlgmr.msra.gmra.mxu0 %v4850_v31  ;;  %7307 = vmatprep.subr.mxu1 %v7568_v48 }
 0xa77   : >> { %7308 = vmatpush3.msra.mxu1 %v7952_v15  ;;  %7292 = vmatprep.subr.mxu0 %v7568_v48 }
 0xa78   : >> { %7309 = vmatprep.subr.mxu1 %v7568_v48  ;;  %7311 = vmatprep.mubr.msk.f32.mxu1 %vm7569_vm4, %v7568_v48 }
 0xa79   : >> { %7310 = vmatpush3.msra.mxu1 %v7958_v17  ;;  %7293 = vmatpush3.msra.mxu0 %v7868_v44 }
 0xa7a   : >> { %7325 = vmatprep.subr.mxu1 %v7568_v48  ;;  %7294 = vmatprep.subr.mxu0 %v7568_v48 }
 0xa7b   : >> { %7295 = vmatpush3.msra.mxu0 %v7871_v45  ;;  %7300 = vmatprep.mubr.msk.f32.mxu0 %vm7569_vm4, %v7568_v48 }
 0xa7c   : >> { %7296 = vmatprep.subr.mxu0 %v7568_v48 }
 0xa7d   : >> { %7297 = vmatpush3.msra.mxu0 %v7874_v46 }
 0xa7e   : >> { %7298 = vmatprep.subr.mxu0 %v7568_v48 }
 0xa7f   : >> { %7299 = vmatpush3.msra.mxu0 %v7879_v49 }
 0xa80   : >> { %7314 = vmatprep.subr.mxu0 %v7568_v48 }
 0xb26   : >> { %v4937_v9 = vpop.f32.mrf.mxu1 }
 0xb28   : >> { %v7263_v12 = vpop.f32.mrf.mxu1 }
 0xb2a   : >> { %v5088_v15 = vpop.f32.mrf.mxu1 }
 0xb2c   : >> { %v7277_v17 = vpop.f32.mrf.mxu1 }
 0xb2e   : >> { %v4856_v43 = vpop.f32.mrf.mxu0  ;;  %v5238_v42 = vpop.f32.mrf.mxu1 }
 0xb2f   : >> { %v4938_v58 = vadd.f32 %v4937_v9, %v4856_v43 }
 0xb30   : >> { %v7256_v47 = vpop.f32.mrf.mxu0  ;;  %v7291_v34 = vpop.f32.mrf.mxu1 }
 0xb32   : >> { %v5013_v61 = vpop.f32.mrf.mxu0 }
 0xb33   : >> { %v5014_v7 = vadd.f32 %v5013_v61, %v4938_v58 }
 0xb34   : >> { %v7270_v63 = vpop.f32.mrf.mxu0 }
 0xb35   : >> { %v5089_v8 = vadd.f32 %v5088_v15, %v5014_v7 }
 0xb36   : >> { %v5165_v41 = vpop.f32.mrf.mxu0 }
 0xb37   : >> { %v5166_v13 = vadd.f32 %v5165_v41, %v5089_v8 }
 0xb38   : >> { %v7284_v16 = vpop.f32.mrf.mxu0 }
 0xb39   : >> { %v5239_v60 = vadd.f32 %v5238_v42, %v5166_v13 }
 0xb3b   : >> { %v5242_v14 = vadd.f32 %v5239_v60, %v4777_v18 }
 0xb3d   : >> { %v5243_v62 = vmul.f32 0.05, %v5242_v14 }
 0xb3f   : >> { %v8439_v19 = vsub.f32 %v8326_v35, %v5243_v62 }
 0xb41   : >> { %v5245_v10 = vmul.f32 0.05, %v8439_v19 }
 0xb43   : >> { %v8443_v20 = vadd.f32 %v5245_v10, %v8330_v37 }
 0xb45   : >> { %v5248_v21 = vsel %vm1405_vm5, %v8443_v20, 0 }
 0xb46   : >> { %v5319_v23 = vand.u32 4294901760, %v5248_v21 }
 0xb48   : >> { %v5320_v24 = vsub.f32 %v5248_v21, %v5319_v23  ;;  %7312 = vmatmul.mubr.f32.vlgmr.msra.gmra.mxu1 %v5319_v23 }
 0xb49   : >> { %7326 = vmatpush3.msra.mxu1 %v7868_v44  ;;  %7333 = vmatprep.mubr.msk.f32.mxu1 %vm7569_vm4, %v7568_v48 }
 0xb4a   : >> { %7327 = vmatprep.subr.mxu1 %v7568_v48  ;;  %v5321_v35 = vand.u32 4294901760, %v5320_v24 }
 0xb4b   : >> { %7328 = vmatpush3.msra.mxu1 %v7871_v45 }
 0xb4c   : >> { %7329 = vmatprep.subr.mxu1 %v7568_v48  ;;  %v5322_v37 = vsub.f32 %v5320_v24, %v5321_v35 }
 0xb4d   : >> { %7330 = vmatpush3.msra.mxu1 %v7874_v46 }
 0xb4e   : >> { %7331 = vmatprep.subr.mxu1 %v7568_v48  ;;  %v5323_v22 = vand.u32 4294901760, %v5322_v37 }
 0xb4f   : >> { %7332 = vmatpush3.msra.mxu1 %v7879_v49 }
 0xb50   : >> { %7334 = vmatmul.mubr.f32.vlgmr.msra.gmra.mxu1 %v5321_v35  ;;  %7347 = vmatprep.subr.mxu1 %v7568_v48 }
 0xb51   : >> { %7301 = vmatmul.mubr.f32.vlgmr.msra.gmra.mxu0 %v5323_v22  ;;  %7348 = vmatpush3.msra.mxu1 %v7868_v44 }
 0xb52   : >> { %7315 = vmatpush3.msra.mxu0 %v7884_v51  ;;  %7349 = vmatprep.subr.mxu1 %v7568_v48 }
 0xb53   : >> { %7316 = vmatprep.subr.mxu0 %v7568_v48  ;;  %7350 = vmatpush3.msra.mxu1 %v7871_v45 }
 0xb54   : >> { %7317 = vmatpush3.msra.mxu0 %v7888_v52  ;;  %7351 = vmatprep.subr.mxu1 %v7568_v48 }
 0xb55   : >> { %7318 = vmatprep.subr.mxu0 %v7568_v48  ;;  %7352 = vmatpush3.msra.mxu1 %v7874_v46 }
 0xb56   : >> { %7319 = vmatpush3.msra.mxu0 %v7892_v53  ;;  %7353 = vmatprep.subr.mxu1 %v7568_v48 }
 0xb57   : >> { %7320 = vmatprep.subr.mxu0 %v7568_v48  ;;  %7322 = vmatprep.mubr.msk.f32.mxu0 %vm7569_vm4, %v7568_v48 }
 0xb58   : >> { %7321 = vmatpush3.msra.mxu0 %v7902_v54  ;;  %7354 = vmatpush3.msra.mxu1 %v7879_v49 }
 0xb59   : >> { %7355 = vmatprep.mubr.msk.f32.mxu1 %vm7569_vm4, %v7568_v48  ;;  %7323 = vmatmul.mubr.f32.vlgmr.msra.gmra.mxu0 %v5320_v24 }
 0xb5a   : >> { %7336 = vmatprep.subr.mxu0 %v7568_v48  ;;  %7356 = vmatmul.mubr.f32.vlgmr.msra.gmra.mxu1 %v5319_v23 }
 0xb5b   : >> { %7337 = vmatpush3.msra.mxu0 %v7915_v55  ;;  %7344 = vmatprep.mubr.msk.f32.mxu0 %vm7569_vm4, %v7568_v48 }
 0xb5c   : >> { %7338 = vmatprep.subr.mxu0 %v7568_v48  ;;  %7365 = vmatprep.subr.mxu1 %v7568_v48 }
 0xb5d   : >> { %7339 = vmatpush3.msra.mxu0 %v7919_v56  ;;  %7366 = vmatpush3.msra.mxu1 %v8035_v11 }
 0xb5e   : >> { %7340 = vmatprep.subr.mxu0 %v7568_v48  ;;  %7367 = vmatprep.subr.mxu1 %v7568_v48 }
 0xb5f   : >> { %7341 = vmatpush3.msra.mxu0 %v7922_v57  ;;  %7368 = vmatpush3.msra.mxu1 %v8040_v39 }
 0xb60   : >> { %7342 = vmatprep.subr.mxu0 %v7568_v48  ;;  %7369 = vmatprep.mubr.msk.f32.mxu1 %vm7569_vm4, %v7568_v48 }
 0xb61   : >> { %7343 = vmatpush3.msra.mxu0 %v7928_v59  ;;  %7379 = vmatprep.subr.mxu1 %v7568_v48 }
 0xb62   : >> { %7345 = vmatmul.mubr.f32.vlgmr.msra.gmra.mxu0 %v5319_v23  ;;  %7358 = vmatprep.subr.mxu0 %v7568_v48 }
 0xb63   : >> { %7359 = vmatpush3.msra.mxu0 %v8010_v25  ;;  %7362 = vmatprep.mubr.msk.f32.mxu0 %vm7569_vm4, %v7568_v48 }
 0xb64   : >> { %7360 = vmatprep.subr.mxu0 %v7568_v48 }
 0xb65   : >> { %7361 = vmatpush3.msra.mxu0 %v8017_v28 }
 0xb66   : >> { %7372 = vmatprep.subr.mxu0 %v7568_v48 }
 0xc08   : >> { %v5416_v44 = vpop.f32.mrf.mxu1 }
 0xc0a   : >> { %v7313_v45 = vpop.f32.mrf.mxu1 }
 0xc0b   : >> { %v7572_v45 = vmov 0  }
 0xc0c   : >> { %7474 = vset.pattern.permute.xlu0 %v7572_v45 }
 0xc10   : >> { %v5573_v46 = vpop.f32.mrf.mxu1 }
 0xc11   : >> { %v5325_v49 = vpop.f32.mrf.mxu0 }
 0xc12   : >> { %v7335_v51 = vpop.f32.mrf.mxu1  ;;  %v5417_v55 = vadd.f32 %v5416_v44, %v5325_v49 }
 0xc13   : >> { %v7302_v52 = vpop.f32.mrf.mxu0 }
 0xc19   : >> { %v5496_v53 = vpop.f32.mrf.mxu0 }
 0xc1a   : >> { %v5731_v54 = vpop.f32.mrf.mxu1  ;;  %v5497_v59 = vadd.f32 %v5496_v53, %v5417_v55  ;;  %v1394_v55 = vld [vmem:[#allocation3] sm:$0xff] }
 0xc1b   : >> { %v7324_v56 = vpop.f32.mrf.mxu0 }
 0xc1c   : >> { %v7357_v57 = vpop.f32.mrf.mxu1  ;;  %v5574_v11 = vadd.f32 %v5573_v46, %v5497_v59 }
 0xc22   : >> { %v5656_v39 = vpop.f32.mrf.mxu0 }
 0xc23   : >> { %v5657_v26 = vadd.f32 %v5656_v39, %v5574_v11 }
 0xc24   : >> { %v7346_v31 = vpop.f32.mrf.mxu0 }
 0xc25   : >> { %v5732_v32 = vadd.f32 %v5731_v54, %v5657_v26 }
 0xc27   : >> { %v5735_v36 = vsub.f32 %v5732_v32, %v8045_v50  ;;  %v5736_v40 = vadd.f32 %v5732_v32, %v8443_v20 }
 0xc29   : >> { %5754 = vrot.lane.b32.xlu1 %v5735_v36, %s7571_s30  ;;  %v5743_v38 = vmul.f32 %v5735_v36, %v5735_v36  ;;  %v5737_v9 = vmul.f32 %v5736_v40, %v8443_v20 }
 0xc2b   : >> { %5745 = vrot.lane.b32.xlu0 %v5743_v38, %s7571_s30  ;;  %v5738_v12 = vsel %vm1405_vm5, %v5737_v9, 0.0 }
 0xc4d   : >> { %5739 = vadd.xlane.f32.xlu1 %v5738_v12  ;;  %v7477_v12 = vld [vmem:[#allocation4] sm:$0xff] }
 0xc9b   : >> { %v5755_v15 = vpop.permute.xlu1 %5754 }
 0xc9c   : >> { %v5756_v17 = vsel %vm1903_vm6, %v5755_v15, 0 }
 0xc9d   : >> { %v5825_v43 = vand.u32 4294901760, %v5756_v17  ;;  %v5746_v42 = vpop.permute.xlu0 %5745 }
 0xc9e   : >> { %v5748_v47 = vsel %vm1903_vm6, %v5746_v42, 0.0 }
 0xc9f   : >> { %v5826_v50 = vsub.f32 %v5756_v17, %v5825_v43  ;;  %7370 = vmatmul.mubr.f32.vlgmr.msra.gmra.mxu1 %v5825_v43  ;;  %5749 = vadd.xlane.f32.xlu0 %v5748_v47 }
 0xca0   : >> { %7380 = vmatpush3.msra.mxu1 %v8010_v25  ;;  %7383 = vmatprep.mubr.msk.f32.mxu1 %vm7569_vm4, %v7568_v48 }
 0xca1   : >> { %v5827_v34 = vand.u32 4294901760, %v5826_v50  ;;  %7381 = vmatprep.subr.mxu1 %v7568_v48 }
 0xca2   : >> { %7382 = vmatpush3.msra.mxu1 %v8017_v28 }
 0xca3   : >> { %v5828_v58 = vsub.f32 %v5826_v50, %v5827_v34  ;;  %7384 = vmatmul.mubr.f32.vlgmr.msra.gmra.mxu1 %v5827_v34  ;;  %7393 = vmatprep.subr.mxu1 %v7568_v48 }
 0xca4   : >> { %7394 = vmatpush3.msra.mxu1 %v8010_v25  ;;  %7397 = vmatprep.mubr.msk.f32.mxu1 %vm7569_vm4, %v7568_v48  ;;  %v7475_v25 = vld [vmem:[%s7912_s22] sm:$0xff]  ;;  %s1399_s22 = scalar_lea.vmem %s374_s17, %s7897_s12  ;;  %s7482_s17 = sshll.u32 (%p1389_p13), %s7573_s27, 4  ;;  %s7483_s17 = int_to_ptr.vmem [resolvable:$false] %s7482_s17 }
 0xca5   : >> { %v5829_v61 = vand.u32 4294901760, %v5828_v58  ;;  %7395 = vmatprep.subr.mxu1 %v7568_v48  ;;  %v1400_v26 = vld [vmem:[%s1399_s22] sm:$0xff]  ;;  %s6277_s22 = sshll.u32 (%p1389_p13), %s357_s20, 4  ;;  %s7484_s19 = scalar_lea.vmem (%p1389_p13), %s7483_s17, 1024  ;;  %s8563_s22 = int_to_ptr.vmem [resolvable:$true] %s6277_s22 }
 0xca6   : >> { %7396 = vmatpush3.msra.mxu1 %v8017_v28  ;;  %s7478_s21 = scalar_lea.vmem (%p1389_p13), %s8563_s22, 512  ;;  %p7485_p3 = scmp.lt.s32.totalorder (%p1389_p13), %s8563_s22, %s7483_s17 }
 0xca7   : >> { %7363 = vmatmul.mubr.f32.vlgmr.msra.gmra.mxu0 %v5829_v61  ;;  %7398 = vmatmul.mubr.f32.vlgmr.msra.gmra.mxu1 %v5825_v43  ;;  %p7479_p0 = scmp.ne.s32.totalorder (%p1389_p13), %s8563_s22, %s7478_s21  ;;  %p7486_p5 = scmp.lt.s32.totalorder (%p1389_p13), %s7484_s19, %s7478_s21 }
 0xca8   : >> { %7373 = vmatpush3.msra.mxu0 %v8014_v27  ;;  %7376 = vmatprep.mubr.msk.f32.mxu0 %vm7569_vm4, %v7568_v48  ;;  %v6220_v27 = vmul.f32 %v7475_v25, %v7475_v25 }
 0xca9   : >> { %7374 = vmatprep.subr.mxu0 %v7568_v48  ;;  %p7480_p1 = pnand (%p1389_p13), %p7479_p0, %p7656_p4  ;;  %p7487_p6 = por (%p1389_p13), %p7486_p5, %p7485_p3 }
 0xcaa   : >> { %7375 = vmatpush3.msra.mxu0 %v8026_v30  ;;  %v6221_v28 = vsel %vm1405_vm5, %v6220_v27, 0.0 }
 0xcab   : >> { %7386 = vmatprep.subr.mxu0 %v7568_v48  ;;  %7377 = vmatmul.mubr.f32.vlgmr.msra.gmra.mxu0 %v5826_v50  ;;  %p7481_p2 = pneg (%p1389_p13), %p7480_p1 }
 0xcac   : >> { %7387 = vmatpush3.msra.mxu0 %v8022_v29  ;;  %7390 = vmatprep.mubr.msk.f32.mxu0 %vm7569_vm4, %v7568_v48 }
 0xcad   : >> { %7388 = vmatprep.subr.mxu0 %v7568_v48  ;;  %6222 = vadd.xlane.f32.xlu0 %v6221_v28  ;;  %p7488_p7 = pnand (%p1389_p13), %p7487_p6, %p7481_p2 }
 0xcae   : >> { %7389 = vmatpush3.msra.mxu0 %v8033_v33 }
 0xcaf   : >> { %7391 = vmatmul.mubr.f32.vlgmr.msra.gmra.mxu0 %v5825_v43 }
 0xcd6   : >> { %v5740_v49 = vpop.xlane.xlu1 %5739 }
 0xcd7   : >> { %v5741_v52 = vmul.f32 0.5, %v5740_v49 }
 0xcd9   : >> { %v5742_v56 = vadd.f32 29.406033, %v5741_v52 }
 0xd28   : >> { %v5750_v46 = vpop.xlane.xlu0 %5749 }
 0xd29   : >> { %v5751_v53 = vmul.f32 0.5, %v5750_v46 }
 0xd36   : >> { %v6223_v51 = vpop.xlane.xlu0 %6222 }
 0xd37   : >> { %v6224_v54 = vmul.f32 0.5, %v6223_v51 }
 0xd39   : >> { %v6230_v59 = vadd.f32 %v6224_v54, %v1394_v55 }
 0xd5f   : >> { %v5912_v7 = vpop.f32.mrf.mxu1 }
 0xd61   : >> { %v7371_v30 = vpop.f32.mrf.mxu1 }
 0xd63   : >> { %v6063_v63 = vpop.f32.mrf.mxu1 }
 0xd65   : >> { %v7385_v8 = vpop.f32.mrf.mxu1 }
 0xd67   : >> { %v5831_v41 = vpop.f32.mrf.mxu0  ;;  %v6213_v13 = vpop.f32.mrf.mxu1 }
 0xd68   : >> { %v5913_v18 = vadd.f32 %v5912_v7, %v5831_v41 }
 0xd69   : >> { %v7364_v29 = vpop.f32.mrf.mxu0  ;;  %v7399_v16 = vpop.f32.mrf.mxu1 }
 0xd6b   : >> { %v5988_v60 = vpop.f32.mrf.mxu0 }
 0xd6c   : >> { %v5989_v14 = vadd.f32 %v5988_v60, %v5913_v18 }
 0xd6d   : >> { %v7378_v48 = vpop.f32.mrf.mxu0 }
 0xd6e   : >> { %v6064_v62 = vadd.f32 %v6063_v63, %v5989_v14 }
 0xd6f   : >> { %v6140_v33 = vpop.f32.mrf.mxu0 }
 0xd70   : >> { %v6141_v10 = vadd.f32 %v6140_v33, %v6064_v62 }
 0xd71   : >> { %v7392_v21 = vpop.f32.mrf.mxu0 }
 0xd72   : >> { %v6214_v23 = vadd.f32 %v6213_v13, %v6141_v10 }
 0xd74   : >> { %v6217_v24 = vadd.f32 %v6214_v23, %v5736_v40  ;;  %v7476_v40 = vld [vmem:[#allocation2] sm:$0xff] }
 0xd76   : >> { %v6218_v35 = vmul.f32 0.025, %v6217_v24 }
 0xd78   : >> { %v6219_v37 = vsub.f32 %v8439_v19, %v6218_v35  ;;  %v5752_v19 = vadd.f32 %v5751_v53, %v5742_v56 }
 0xd7a   : >> { %v6225_v22 = vmul.f32 %v6219_v37, %v6219_v37 }
 0xd7c   : >> { %v6226_v44 = vsel %vm1405_vm5, %v6225_v22, 0.0 }
 0xd7d   : >> { %6227 = vadd.xlane.f32.xlu1 %v6226_v44 }
 0xe06   : >> { %v6228_v57 = vpop.xlane.xlu1 %6227 }
 0xe07   : >> { %v6229_v11 = vmul.f32 0.5, %v6228_v57 }
 0xe09   : >> { %v6231_v39 = vadd.f32 %v6229_v11, %v5752_v19 }
 0xe0b   : >> { %v6232_v31 = vsub.f32 %v6230_v59, %v6231_v39 }
 0xe0d   : >> { %vm6233_vm8 = vcmp.lt.f32.partialorder %v1400_v26, %v6232_v31 }
 0xe0e   : >> { %v6234_v32 = vsel %vm6233_vm8, 1, %v7572_v45  ;;  %v6240_v36 = vsel %vm6233_vm8, %v5752_v19, %v1394_v55 }
 0xe0f   : >> { %6244 = vst.msk [vmem:[#allocation3] sm:$0xff] %vm6243_vm7, %v6240_v36  ;;  %6249 = vst.msk [vmem:[%s6248_s15] sm:$0xff] %vm6243_vm7, %v6240_v36  ;;  %6236 = vperm.xlu0 %7474, %v6234_v32  }
 0xe8a   : >> { %v6237_v38 = vpop.permute.xlu0 %6236  ;;  %1391 = sbr.rel (!%p1389_p13) target bundleno = 596 (0x254), region = 115 }
 0xe8b   : >> { %vm6238_vm9 = vcmp.eq.s32.totalorder %v6237_v38, 1 }
 0xe8c   : >> { %v6239_v9 = vsel %vm6238_vm9, %v8443_v20, %v7476_v40  ;;  %v6241_v15 = vsel %vm6238_vm9, %v6217_v24, %v7477_v12 }
 0xe8d   : >> { %6242 = vst.msk [vmem:[#allocation2] sm:$0xff] %vm1405_vm5, %v6239_v9  ;;  %6245 = vst.msk [vmem:[#allocation4] sm:$0xff] %vm1405_vm5, %v6241_v15 }
 0xe8e   : >> { %6247 = vst.msk [vmem:[%s6246_s0] sm:$0xff] %vm1405_vm5, %v6239_v9  ;;  %s8627_s0 = sand.u32 (%p1389_p13), 1, %s7542_s25  }
 0xe8f   : > { %s8567_s10 = scalar_lea.sflag [#allocation6], %s8627_s0 }
 0xe90   : > { %7491 = shalt.err (!%p7488_p7)
}
 0xe91   : > { %s7492_s23 = scalar_lea.hbm %s8559_s16, 512  ;;  %s7496_s30 = scalar_lea.hbm %s8619_s7, 1536 }
 0xe92   : > { %p7493_p9 = scmp.ne.s32.totalorder %s8559_s16, %s7492_s23  ;;  %p7497_p12 = scmp.lt.s32.totalorder %s8559_s16, %s8619_s7 }
 0xe93   : > { %p7498_p13 = scmp.lt.s32.totalorder %s7496_s30, %s7492_s23 }
 0xe94   : > { %p7494_p10 = pnand %p7493_p9, %p7656_p4 }
 0xe95   : > { %p7499_p0 = por %p7498_p13, %p7497_p12 }
 0xe96   : > { %p7495_p11 = pneg %p7494_p10 }
 0xe98   : > { %p7500_p1 = pnand %p7499_p0, %p7495_p11 }
 0xe9a   : > { %7503 = shalt.err (!%p7500_p1)
}
 0xe9b   : > { %s7574_s18 = smov 128   ;;  %s7575_s0 = smov 8  }
 0xe9c   : > { %7400 = dma.vmem_to_hbm [thread:$0]  (%p7656_p4), %s8563_s22, 512, %s8559_s16, %s8567_s10, %s7574_s18, %s7574_s18, %s7575_s0  }
 0xe9d PF: > { %p7406_p2 = scmp.ge.s32.totalorder %s7558_s29, 2  ;;  %s6303_s21 = sand.u32 1, %s7538_s24  }
 0xe9e   : > { %s6304_s27 = scalar_lea.sflag [#allocation6], %s6303_s21 }
 0xe9f   : > { %p7403_p3 = pnand %p7406_p2, %p7663_p8 }
 0xea1   : > { %p7404_p5 = pneg %p7403_p3 }
 0xea3   : > { %7533 = dma.done.wait (%p7404_p5), %s6304_s27, 512  }
 0xea4   : > { %7535 = vsyncadd (%p7404_p5), %s6304_s27, 4294966784  ;;  %s21_s29 = sadd.s32 1, %s7558_s29   ;;  %s8628_s24 = smov %s7542_s25 }
 0xea5   : > { %p18_p6 = scmp.ge.s32.totalorder %s21_s29, 5   ;;  %s8629_s25 = smov %s7546_s26 }
 0xea6   : > { %s8630_s26 = smov %s7669_s14  ;;  %s8631_s27 = smov %s7554_s28 }
 0xea7   : > { %s8632_s28 = smov %s8634_s9  ;;  %20 = sbr.rel (!%p18_p6) target bundleno = 6 (0x6), region = 126 }
 0xeac   :  { %6309 = vsyncpa [#allocation6], 1 }
 0xead   :  { %6311 = vsyncpa [#allocation6 + $0x1], 1 }

</bundles_post_ra>
